<compile_context>
chip_gen: v7x
topology: tpu7x:2x2x1
jax: 0.10.0
libtpu: 0.0.40
codegen_flags: <defaults>
</compile_context>

<pallas_src>
import functools
import math

import jax
import jax.numpy as jnp
from jax.experimental import pallas as pl
from jax.experimental.pallas import tpu as pltpu

# Max output rows (of the flattened H*W row dim) accumulated at once in f32.
_ACC_ROWS = 256


def _basic_block_kernel(x_ref, w1_ref, b1_ref, w2_ref, b2_ref, o_ref,
                        xp_scr, y1p_scr,
                        *, k, d, pad, H, W, H1, W1, H2, W2):
    # x_ref   : (1, H, W, C_in)         unpadded NHWC input tile (one batch element)
    # w1_ref  : (k, k*C_in, C_out)      conv1 weights: one (k*C_in, C_out) matrix per dy
    # b1_ref  : (1, C_out)
    # w2_ref  : (k, k*C_out, C_out)
    # b2_ref  : (1, C_out)
    # o_ref   : (1, H2, W2, C_out)
    # xp_scr  : (H+2p, W+2p, C_in)      padded input staging (input dtype)
    # y1p_scr : (H1+2p, W1+2p, C_out)   padded conv1-output staging (input dtype)
    C_in = x_ref.shape[-1]
    C_out = o_ref.shape[-1]
    Hp, Wp = H + 2 * pad, W + 2 * pad
    H1p, W1p = H1 + 2 * pad, W1 + 2 * pad

    def zero_halo(ref, Hs, Ws, C):
        # Zero only the halo ring (top/bottom rows, left/right columns).
        if pad > 0:
            ref[:pad, :, :] = jnp.zeros((pad, Ws, C), ref.dtype)
            ref[Hs - pad:, :, :] = jnp.zeros((pad, Ws, C), ref.dtype)
            ref[:, :pad, :] = jnp.zeros((Hs, pad, C), ref.dtype)
            ref[:, Ws - pad:, :] = jnp.zeros((Hs, pad, C), ref.dtype)

    # ---- stage padded input ----
    zero_halo(xp_scr, Hp, Wp, C_in)
    xp_scr[pad:pad + H, pad:pad + W, :] = x_ref[0]

    def conv_relu(src_ref, w_ref, b_ref, Ho, Wo, Cc, store):
        # 1-axis im2col along W: k shifted slices concatenated on the channel (lane) axis
        # -> each conv row is one MXU matmul with contraction depth k*Cc.
        xcol = jnp.concatenate(
            [src_ref[:, dx * d:dx * d + Wo, :] for dx in range(k)], axis=-1)
        bias = b_ref[...].astype(jnp.float32)
        # Row-block the output so the f32 accumulator stays register-sized.
        th_max = min(Ho, max(1, _ACC_ROWS // Wo))
        for h0 in range(0, Ho, th_max):
            th = min(th_max, Ho - h0)
            acc = jnp.zeros((th * Wo, C_out), jnp.float32)
            for dy in range(k):
                patch = xcol[h0 + dy * d:h0 + dy * d + th].reshape(th * Wo, k * Cc)
                acc = acc + jnp.dot(patch, w_ref[dy],
                                    preferred_element_type=jnp.float32)
            y = jnp.maximum(acc + bias, 0.0)
            store(h0, th, y.reshape(th, Wo, C_out))

    # ---- conv1 + ReLU -> padded VMEM staging (input dtype; native MXU path for conv2) ----
    zero_halo(y1p_scr, H1p, W1p, C_out)

    def store_y1(h0, th, y):
        y1p_scr[pad + h0:pad + h0 + th, pad:pad + W1, :] = y.astype(y1p_scr.dtype)

    conv_relu(xp_scr, w1_ref, b1_ref, H1, W1, C_in, store_y1)

    # ---- conv2 + ReLU -> output ----
    def store_out(h0, th, y):
        o_ref[0, h0:h0 + th, :, :] = y.astype(o_ref.dtype)

    conv_relu(y1p_scr, w2_ref, b2_ref, H2, W2, C_out, store_out)


def basic_block_forward(x, w1, b1, w2, b2, *, dilation=1):
    """x: (N, C_in, H, W) NCHW; w1: (C_out, C_in, k, k); w2: (C_out, C_out, k, k)."""
    N, C_in, H, W = x.shape
    C_out, _, k, _ = w1.shape
    d = dilation
    # PyTorch helper: padding = floor((dilation*(k-1) + 2 - stride)/2), stride=1 here.
    pad = math.floor((d * (k - 1) + 2 - 1) / 2)

    H1 = H + 2 * pad - d * (k - 1)
    W1 = W + 2 * pad - d * (k - 1)
    H2 = H1 + 2 * pad - d * (k - 1)
    W2 = W1 + 2 * pad - d * (k - 1)

    # NHWC internal layout: channels on the lane dim -> MXU-natural contraction.
    x_nhwc = jnp.transpose(x, (0, 2, 3, 1))

    # Row-im2col weight layout: (k, k*C, C_out), contraction ordered as (dx, c_in).
    w1_r = jnp.transpose(w1, (2, 3, 1, 0)).reshape(k, k * C_in, C_out)
    w2_r = jnp.transpose(w2, (2, 3, 1, 0)).reshape(k, k * C_out, C_out)
    b1_r = b1.reshape(1, C_out)
    b2_r = b2.reshape(1, C_out)

    kernel = functools.partial(
        _basic_block_kernel, k=k, d=d, pad=pad,
        H=H, W=W, H1=H1, W1=W1, H2=H2, W2=W2)

    # Per-step VMEM footprint is one image tile (+ weights + two padded staging
    # scratches), so the default scoped-VMEM limits are fine at these sizes.
    out_nhwc = pl.pallas_call(
        kernel,
        out_shape=jax.ShapeDtypeStruct((N, H2, W2, C_out), x.dtype),
        grid=(N,),
        in_specs=[
            pl.BlockSpec((1, H, W, C_in), lambda n: (n, 0, 0, 0)),
            pl.BlockSpec((k, k * C_in, C_out), lambda n: (0, 0, 0)),
            pl.BlockSpec((1, C_out), lambda n: (0, 0)),
            pl.BlockSpec((k, k * C_out, C_out), lambda n: (0, 0, 0)),
            pl.BlockSpec((1, C_out), lambda n: (0, 0)),
        ],
        out_specs=pl.BlockSpec((1, H2, W2, C_out), lambda n: (n, 0, 0, 0)),
        scratch_shapes=[
            pltpu.VMEM((H + 2 * pad, W + 2 * pad, C_in), x.dtype),
            pltpu.VMEM((H1 + 2 * pad, W1 + 2 * pad, C_out), x.dtype),
        ],
        compiler_params=pltpu.CompilerParams(
            dimension_semantics=("parallel",)),
    )(x_nhwc, w1_r, b1_r, w2_r, b2_r)

    return jnp.transpose(out_nhwc, (0, 3, 1, 2))  # back to NCHW


if __name__ == "__main__":
    N, C_in, C_out, H, W = 2, 4, 8, 16, 16
    k, dilation = 3, 1

    key = jax.random.PRNGKey(0)
    kx, kw1, kb1, kw2, kb2 = jax.random.split(key, 5)
    x = jax.random.normal(kx, (N, C_in, H, W), dtype=jnp.float32)
    w1 = jax.random.normal(kw1, (C_out, C_in, k, k), dtype=jnp.float32) * 0.1
    b1 = jax.random.normal(kb1, (C_out,), dtype=jnp.float32) * 0.1
    w2 = jax.random.normal(kw2, (C_out, C_out, k, k), dtype=jnp.float32) * 0.1
    b2 = jax.random.normal(kb2, (C_out,), dtype=jnp.float32) * 0.1

    out = basic_block_forward(x, w1, b1, w2, b2, dilation=dilation)
    out = jax.block_until_ready(out)

    # Pure-JAX reference matching PyTorch BasicBlock: conv1 -> ReLU -> conv2 -> ReLU.
    pad = math.floor((dilation * (k - 1) + 2 - 1) / 2)

    def conv_ref(v, w, b):
        o = jax.lax.conv_general_dilated(
            v, w, window_strides=(1, 1), padding=((pad, pad), (pad, pad)),
            rhs_dilation=(dilation, dilation),
            dimension_numbers=("NCHW", "OIHW", "NCHW"))
        return o + b[None, :, None, None]

    ref = jax.nn.relu(conv_ref(jax.nn.relu(conv_ref(x, w1, b1)), w2, b2))

    assert out.shape == ref.shape, (out.shape, ref.shape)
    assert jnp.allclose(out, ref, rtol=1e-4, atol=1e-4), float(jnp.max(jnp.abs(out - ref)))

    print("KERNEL_OK")
</pallas_src>

<mosaic_0001>
module attributes {stable_mosaic.version = 11 : i64} {
  func.func @_basic_block_kernel(%arg0: i32, %arg1: memref<1x16x16x4xf32, #tpu.memory_space<vmem>>, %arg2: memref<3x12x8xf32, #tpu.memory_space<vmem>>, %arg3: memref<1x8xf32, #tpu.memory_space<vmem>>, %arg4: memref<3x24x8xf32, #tpu.memory_space<vmem>>, %arg5: memref<1x8xf32, #tpu.memory_space<vmem>>, %arg6: memref<1x16x16x8xf32, #tpu.memory_space<vmem>>, %arg7: memref<18x18x4xf32, #tpu.memory_space<vmem>>, %arg8: memref<18x18x8xf32, #tpu.memory_space<vmem>>) attributes {dimension_semantics = [#tpu.dimension_semantics<parallel>], iteration_bounds = array<i64: 2>, scalar_prefetch = 0 : i64, scratch_operands = 2 : i64, tpu.core_type = #tpu.core_type<tc>, window_params = [{transform_indices = @transform_0, window_bounds = array<i64: 1, 16, 16, 4>}, {pipeline_mode = #tpu.pipeline_mode<synchronous>, transform_indices = @transform_1, window_bounds = array<i64: 3, 12, 8>}, {pipeline_mode = #tpu.pipeline_mode<synchronous>, transform_indices = @transform_2, window_bounds = array<i64: 1, 8>}, {pipeline_mode = #tpu.pipeline_mode<synchronous>, transform_indices = @transform_3, window_bounds = array<i64: 3, 24, 8>}, {pipeline_mode = #tpu.pipeline_mode<synchronous>, transform_indices = @transform_4, window_bounds = array<i64: 1, 8>}, {transform_indices = @transform_5, window_bounds = array<i64: 1, 16, 16, 8>}]} {
    %cst = arith.constant 0.000000e+00 : f32
    %0 = vector.broadcast %cst : f32 to vector<1x18x4xf32>
    %c0 = arith.constant 0 : index
    %c0_0 = arith.constant 0 : index
    %c0_1 = arith.constant 0 : index
    %1 = vector.load %arg7[%c0, %c0_0, %c0_1] : memref<18x18x4xf32, #tpu.memory_space<vmem>>, vector<1x18x4xf32>
    tpu.vector_store %arg7[%c0, %c0_0, %c0_1], %0 {strides = array<i32>} : memref<18x18x4xf32, #tpu.memory_space<vmem>>, vector<1x18x4xf32>,
    %cst_2 = arith.constant 0.000000e+00 : f32
    %2 = vector.broadcast %cst_2 : f32 to vector<1x18x4xf32>
    %c17 = arith.constant 17 : index
    %c0_3 = arith.constant 0 : index
    %c0_4 = arith.constant 0 : index
    %3 = vector.load %arg7[%c17, %c0_3, %c0_4] : memref<18x18x4xf32, #tpu.memory_space<vmem>>, vector<1x18x4xf32>
    tpu.vector_store %arg7[%c17, %c0_3, %c0_4], %2 {strides = array<i32>} : memref<18x18x4xf32, #tpu.memory_space<vmem>>, vector<1x18x4xf32>,
    %cst_5 = arith.constant 0.000000e+00 : f32
    %4 = vector.broadcast %cst_5 : f32 to vector<18x1x4xf32>
    %c0_6 = arith.constant 0 : index
    %c0_7 = arith.constant 0 : index
    %c0_8 = arith.constant 0 : index
    %5 = vector.load %arg7[%c0_6, %c0_7, %c0_8] : memref<18x18x4xf32, #tpu.memory_space<vmem>>, vector<18x1x4xf32>
    tpu.vector_store %arg7[%c0_6, %c0_7, %c0_8], %4 {strides = array<i32>} : memref<18x18x4xf32, #tpu.memory_space<vmem>>, vector<18x1x4xf32>,
    %cst_9 = arith.constant 0.000000e+00 : f32
    %6 = vector.broadcast %cst_9 : f32 to vector<18x1x4xf32>
    %c0_10 = arith.constant 0 : index
    %c17_11 = arith.constant 17 : index
    %c0_12 = arith.constant 0 : index
    %7 = vector.load %arg7[%c0_10, %c17_11, %c0_12] : memref<18x18x4xf32, #tpu.memory_space<vmem>>, vector<18x1x4xf32>
    tpu.vector_store %arg7[%c0_10, %c17_11, %c0_12], %6 {strides = array<i32>} : memref<18x18x4xf32, #tpu.memory_space<vmem>>, vector<18x1x4xf32>,
    %c0_13 = arith.constant 0 : index
    %c0_14 = arith.constant 0 : index
    %c0_15 = arith.constant 0 : index
    %c0_16 = arith.constant 0 : index
    %8 = vector.load %arg1[%c0_13, %c0_14, %c0_15, %c0_16] : memref<1x16x16x4xf32, #tpu.memory_space<vmem>>, vector<1x16x16x4xf32>
    %9 = vector.shape_cast %8 : vector<1x16x16x4xf32> to vector<16x16x4xf32>
    %c1 = arith.constant 1 : index
    %c1_17 = arith.constant 1 : index
    %c0_18 = arith.constant 0 : index
    %10 = vector.load %arg7[%c1, %c1_17, %c0_18] : memref<18x18x4xf32, #tpu.memory_space<vmem>>, vector<16x16x4xf32>
    tpu.vector_store %arg7[%c1, %c1_17, %c0_18], %9 {strides = array<i32>} : memref<18x18x4xf32, #tpu.memory_space<vmem>>, vector<16x16x4xf32>,
    %cst_19 = arith.constant 0.000000e+00 : f32
    %11 = vector.broadcast %cst_19 : f32 to vector<1x18x8xf32>
    %c0_20 = arith.constant 0 : index
    %c0_21 = arith.constant 0 : index
    %c0_22 = arith.constant 0 : index
    %12 = vector.load %arg8[%c0_20, %c0_21, %c0_22] : memref<18x18x8xf32, #tpu.memory_space<vmem>>, vector<1x18x8xf32>
    tpu.vector_store %arg8[%c0_20, %c0_21, %c0_22], %11 {strides = array<i32>} : memref<18x18x8xf32, #tpu.memory_space<vmem>>, vector<1x18x8xf32>,
    %cst_23 = arith.constant 0.000000e+00 : f32
    %13 = vector.broadcast %cst_23 : f32 to vector<1x18x8xf32>
    %c17_24 = arith.constant 17 : index
    %c0_25 = arith.constant 0 : index
    %c0_26 = arith.constant 0 : index
    %14 = vector.load %arg8[%c17_24, %c0_25, %c0_26] : memref<18x18x8xf32, #tpu.memory_space<vmem>>, vector<1x18x8xf32>
    tpu.vector_store %arg8[%c17_24, %c0_25, %c0_26], %13 {strides = array<i32>} : memref<18x18x8xf32, #tpu.memory_space<vmem>>, vector<1x18x8xf32>,
    %cst_27 = arith.constant 0.000000e+00 : f32
    %15 = vector.broadcast %cst_27 : f32 to vector<18x1x8xf32>
    %c0_28 = arith.constant 0 : index
    %c0_29 = arith.constant 0 : index
    %c0_30 = arith.constant 0 : index
    %16 = vector.load %arg8[%c0_28, %c0_29, %c0_30] : memref<18x18x8xf32, #tpu.memory_space<vmem>>, vector<18x1x8xf32>
    tpu.vector_store %arg8[%c0_28, %c0_29, %c0_30], %15 {strides = array<i32>} : memref<18x18x8xf32, #tpu.memory_space<vmem>>, vector<18x1x8xf32>,
    %cst_31 = arith.constant 0.000000e+00 : f32
    %17 = vector.broadcast %cst_31 : f32 to vector<18x1x8xf32>
    %c0_32 = arith.constant 0 : index
    %c17_33 = arith.constant 17 : index
    %c0_34 = arith.constant 0 : index
    %18 = vector.load %arg8[%c0_32, %c17_33, %c0_34] : memref<18x18x8xf32, #tpu.memory_space<vmem>>, vector<18x1x8xf32>
    tpu.vector_store %arg8[%c0_32, %c17_33, %c0_34], %17 {strides = array<i32>} : memref<18x18x8xf32, #tpu.memory_space<vmem>>, vector<18x1x8xf32>,
    %c0_35 = arith.constant 0 : index
    %c0_36 = arith.constant 0 : index
    %c0_37 = arith.constant 0 : index
    %19 = vector.load %arg7[%c0_35, %c0_36, %c0_37] : memref<18x18x4xf32, #tpu.memory_space<vmem>>, vector<18x16x4xf32>
    %c0_38 = arith.constant 0 : index
    %c1_39 = arith.constant 1 : index
    %c0_40 = arith.constant 0 : index
    %20 = vector.load %arg7[%c0_38, %c1_39, %c0_40] : memref<18x18x4xf32, #tpu.memory_space<vmem>>, vector<18x16x4xf32>
    %c0_41 = arith.constant 0 : index
    %c2 = arith.constant 2 : index
    %c0_42 = arith.constant 0 : index
    %21 = vector.load %arg7[%c0_41, %c2, %c0_42] : memref<18x18x4xf32, #tpu.memory_space<vmem>>, vector<18x16x4xf32>
    %22 = tpu.concatenate %19, %20, %21 in 2 : vector<18x16x4xf32>, vector<18x16x4xf32>, vector<18x16x4xf32> -> vector<18x16x12xf32>
    %c0_43 = arith.constant 0 : index
    %c0_44 = arith.constant 0 : index
    %23 = vector.load %arg3[%c0_43, %c0_44] : memref<1x8xf32, #tpu.memory_space<vmem>>, vector<1x8xf32>
    %cst_45 = arith.constant 0.000000e+00 : f32
    %24 = vector.broadcast %cst_45 : f32 to vector<256x8xf32>
    %25 = vector.extract_strided_slice %22 {offsets = [0, 0, 0], sizes = [16, 16, 12], strides = [1, 1, 1]} : vector<18x16x12xf32> to vector<16x16x12xf32>
    %26 = vector.shape_cast %25 : vector<16x16x12xf32> to vector<256x12xf32>
    %c0_46 = arith.constant 0 : index
    %c0_47 = arith.constant 0 : index
    %c0_48 = arith.constant 0 : index
    %27 = vector.load %arg2[%c0_46, %c0_47, %c0_48] : memref<3x12x8xf32, #tpu.memory_space<vmem>>, vector<1x12x8xf32>
    %28 = vector.shape_cast %27 : vector<1x12x8xf32> to vector<12x8xf32>
    %cst_49 = arith.constant dense<0.000000e+00> : vector<256x8xf32>
    %29 = tpu.matmul %26, %28, %cst_49 {dimension_numbers = #tpu.dot_dimension_numbers<[1], [0], [0], [1], [0, 0, 1, 1], [], []>} : vector<256x12xf32>, vector<12x8xf32>, vector<256x8xf32> -> vector<256x8xf32>
    %30 = arith.addf %24, %29 : vector<256x8xf32>
    %31 = vector.extract_strided_slice %22 {offsets = [1, 0, 0], sizes = [16, 16, 12], strides = [1, 1, 1]} : vector<18x16x12xf32> to vector<16x16x12xf32>
    %32 = vector.shape_cast %31 : vector<16x16x12xf32> to vector<256x12xf32>
    %c1_50 = arith.constant 1 : index
    %c0_51 = arith.constant 0 : index
    %c0_52 = arith.constant 0 : index
    %33 = vector.load %arg2[%c1_50, %c0_51, %c0_52] : memref<3x12x8xf32, #tpu.memory_space<vmem>>, vector<1x12x8xf32>
    %34 = vector.shape_cast %33 : vector<1x12x8xf32> to vector<12x8xf32>
    %cst_53 = arith.constant dense<0.000000e+00> : vector<256x8xf32>
    %35 = tpu.matmul %32, %34, %cst_53 {dimension_numbers = #tpu.dot_dimension_numbers<[1], [0], [0], [1], [0, 0, 1, 1], [], []>} : vector<256x12xf32>, vector<12x8xf32>, vector<256x8xf32> -> vector<256x8xf32>
    %36 = arith.addf %30, %35 : vector<256x8xf32>
    %37 = vector.extract_strided_slice %22 {offsets = [2, 0, 0], sizes = [16, 16, 12], strides = [1, 1, 1]} : vector<18x16x12xf32> to vector<16x16x12xf32>
    %38 = vector.shape_cast %37 : vector<16x16x12xf32> to vector<256x12xf32>
    %c2_54 = arith.constant 2 : index
    %c0_55 = arith.constant 0 : index
    %c0_56 = arith.constant 0 : index
    %39 = vector.load %arg2[%c2_54, %c0_55, %c0_56] : memref<3x12x8xf32, #tpu.memory_space<vmem>>, vector<1x12x8xf32>
    %40 = vector.shape_cast %39 : vector<1x12x8xf32> to vector<12x8xf32>
    %cst_57 = arith.constant dense<0.000000e+00> : vector<256x8xf32>
    %41 = tpu.matmul %38, %40, %cst_57 {dimension_numbers = #tpu.dot_dimension_numbers<[1], [0], [0], [1], [0, 0, 1, 1], [], []>} : vector<256x12xf32>, vector<12x8xf32>, vector<256x8xf32> -> vector<256x8xf32>
    %42 = arith.addf %36, %41 : vector<256x8xf32>
    %43 = vector.broadcast %23 : vector<1x8xf32> to vector<256x8xf32>
    %44 = arith.addf %42, %43 : vector<256x8xf32>
    %cst_58 = arith.constant 0.000000e+00 : f32
    %45 = vector.broadcast %cst_58 : f32 to vector<256x8xf32>
    %46 = arith.maximumf %44, %45 : vector<256x8xf32>
    %47 = vector.shape_cast %46 : vector<256x8xf32> to vector<16x16x8xf32>
    %c1_59 = arith.constant 1 : index
    %c1_60 = arith.constant 1 : index
    %c0_61 = arith.constant 0 : index
    %48 = vector.load %arg8[%c1_59, %c1_60, %c0_61] : memref<18x18x8xf32, #tpu.memory_space<vmem>>, vector<16x16x8xf32>
    tpu.vector_store %arg8[%c1_59, %c1_60, %c0_61], %47 {strides = array<i32>} : memref<18x18x8xf32, #tpu.memory_space<vmem>>, vector<16x16x8xf32>,
    %c0_62 = arith.constant 0 : index
    %c0_63 = arith.constant 0 : index
    %c0_64 = arith.constant 0 : index
    %49 = vector.load %arg8[%c0_62, %c0_63, %c0_64] : memref<18x18x8xf32, #tpu.memory_space<vmem>>, vector<18x16x8xf32>
    %c0_65 = arith.constant 0 : index
    %c1_66 = arith.constant 1 : index
    %c0_67 = arith.constant 0 : index
    %50 = vector.load %arg8[%c0_65, %c1_66, %c0_67] : memref<18x18x8xf32, #tpu.memory_space<vmem>>, vector<18x16x8xf32>
    %c0_68 = arith.constant 0 : index
    %c2_69 = arith.constant 2 : index
    %c0_70 = arith.constant 0 : index
    %51 = vector.load %arg8[%c0_68, %c2_69, %c0_70] : memref<18x18x8xf32, #tpu.memory_space<vmem>>, vector<18x16x8xf32>
    %52 = tpu.concatenate %49, %50, %51 in 2 : vector<18x16x8xf32>, vector<18x16x8xf32>, vector<18x16x8xf32> -> vector<18x16x24xf32>
    %c0_71 = arith.constant 0 : index
    %c0_72 = arith.constant 0 : index
    %53 = vector.load %arg5[%c0_71, %c0_72] : memref<1x8xf32, #tpu.memory_space<vmem>>, vector<1x8xf32>
    %cst_73 = arith.constant 0.000000e+00 : f32
    %54 = vector.broadcast %cst_73 : f32 to vector<256x8xf32>
    %55 = vector.extract_strided_slice %52 {offsets = [0, 0, 0], sizes = [16, 16, 24], strides = [1, 1, 1]} : vector<18x16x24xf32> to vector<16x16x24xf32>
    %56 = vector.shape_cast %55 : vector<16x16x24xf32> to vector<256x24xf32>
    %c0_74 = arith.constant 0 : index
    %c0_75 = arith.constant 0 : index
    %c0_76 = arith.constant 0 : index
    %57 = vector.load %arg4[%c0_74, %c0_75, %c0_76] : memref<3x24x8xf32, #tpu.memory_space<vmem>>, vector<1x24x8xf32>
    %58 = vector.shape_cast %57 : vector<1x24x8xf32> to vector<24x8xf32>
    %cst_77 = arith.constant dense<0.000000e+00> : vector<256x8xf32>
    %59 = tpu.matmul %56, %58, %cst_77 {dimension_numbers = #tpu.dot_dimension_numbers<[1], [0], [0], [1], [0, 0, 1, 1], [], []>} : vector<256x24xf32>, vector<24x8xf32>, vector<256x8xf32> -> vector<256x8xf32>
    %60 = arith.addf %54, %59 : vector<256x8xf32>
    %61 = vector.extract_strided_slice %52 {offsets = [1, 0, 0], sizes = [16, 16, 24], strides = [1, 1, 1]} : vector<18x16x24xf32> to vector<16x16x24xf32>
    %62 = vector.shape_cast %61 : vector<16x16x24xf32> to vector<256x24xf32>
    %c1_78 = arith.constant 1 : index
    %c0_79 = arith.constant 0 : index
    %c0_80 = arith.constant 0 : index
    %63 = vector.load %arg4[%c1_78, %c0_79, %c0_80] : memref<3x24x8xf32, #tpu.memory_space<vmem>>, vector<1x24x8xf32>
    %64 = vector.shape_cast %63 : vector<1x24x8xf32> to vector<24x8xf32>
    %cst_81 = arith.constant dense<0.000000e+00> : vector<256x8xf32>
    %65 = tpu.matmul %62, %64, %cst_81 {dimension_numbers = #tpu.dot_dimension_numbers<[1], [0], [0], [1], [0, 0, 1, 1], [], []>} : vector<256x24xf32>, vector<24x8xf32>, vector<256x8xf32> -> vector<256x8xf32>
    %66 = arith.addf %60, %65 : vector<256x8xf32>
    %67 = vector.extract_strided_slice %52 {offsets = [2, 0, 0], sizes = [16, 16, 24], strides = [1, 1, 1]} : vector<18x16x24xf32> to vector<16x16x24xf32>
    %68 = vector.shape_cast %67 : vector<16x16x24xf32> to vector<256x24xf32>
    %c2_82 = arith.constant 2 : index
    %c0_83 = arith.constant 0 : index
    %c0_84 = arith.constant 0 : index
    %69 = vector.load %arg4[%c2_82, %c0_83, %c0_84] : memref<3x24x8xf32, #tpu.memory_space<vmem>>, vector<1x24x8xf32>
    %70 = vector.shape_cast %69 : vector<1x24x8xf32> to vector<24x8xf32>
    %cst_85 = arith.constant dense<0.000000e+00> : vector<256x8xf32>
    %71 = tpu.matmul %68, %70, %cst_85 {dimension_numbers = #tpu.dot_dimension_numbers<[1], [0], [0], [1], [0, 0, 1, 1], [], []>} : vector<256x24xf32>, vector<24x8xf32>, vector<256x8xf32> -> vector<256x8xf32>
    %72 = arith.addf %66, %71 : vector<256x8xf32>
    %73 = vector.broadcast %53 : vector<1x8xf32> to vector<256x8xf32>
    %74 = arith.addf %72, %73 : vector<256x8xf32>
    %cst_86 = arith.constant 0.000000e+00 : f32
    %75 = vector.broadcast %cst_86 : f32 to vector<256x8xf32>
    %76 = arith.maximumf %74, %75 : vector<256x8xf32>
    %77 = vector.shape_cast %76 : vector<256x8xf32> to vector<16x16x8xf32>
    %c0_87 = arith.constant 0 : index
    %c0_88 = arith.constant 0 : index
    %c0_89 = arith.constant 0 : index
    %c0_90 = arith.constant 0 : index
    %78 = vector.load %arg6[%c0_87, %c0_88, %c0_89, %c0_90] : memref<1x16x16x8xf32, #tpu.memory_space<vmem>>, vector<1x16x16x8xf32>
    %79 = vector.shape_cast %78 : vector<1x16x16x8xf32> to vector<16x16x8xf32>
    %80 = vector.shape_cast %77 : vector<16x16x8xf32> to vector<1x16x16x8xf32>
    tpu.vector_store %arg6[%c0_87, %c0_88, %c0_89, %c0_90], %80 {strides = array<i32>} : memref<1x16x16x8xf32, #tpu.memory_space<vmem>>, vector<1x16x16x8xf32>,
    return
  }
  func.func @transform_0(%arg0: i32) -> (i32, i32, i32, i32) {
    %c0_i32 = arith.constant 0 : i32
    %c0_i32_0 = arith.constant 0 : i32
    %c0_i32_1 = arith.constant 0 : i32
    %c0_i32_2 = arith.constant 0 : i32
    return %arg0, %c0_i32, %c0_i32_0, %c0_i32_1 : i32, i32, i32, i32
  }
  func.func @transform_1(%arg0: i32) -> (i32, i32, i32) {
    %c0_i32 = arith.constant 0 : i32
    %c0_i32_0 = arith.constant 0 : i32
    %c0_i32_1 = arith.constant 0 : i32
    %c0_i32_2 = arith.constant 0 : i32
    return %c0_i32, %c0_i32_0, %c0_i32_1 : i32, i32, i32
  }
  func.func @transform_2(%arg0: i32) -> (i32, i32) {
    %c0_i32 = arith.constant 0 : i32
    %c0_i32_0 = arith.constant 0 : i32
    %c0_i32_1 = arith.constant 0 : i32
    return %c0_i32, %c0_i32_0 : i32, i32
  }
  func.func @transform_3(%arg0: i32) -> (i32, i32, i32) {
    %c0_i32 = arith.constant 0 : i32
    %c0_i32_0 = arith.constant 0 : i32
    %c0_i32_1 = arith.constant 0 : i32
    %c0_i32_2 = arith.constant 0 : i32
    return %c0_i32, %c0_i32_0, %c0_i32_1 : i32, i32, i32
  }
  func.func @transform_4(%arg0: i32) -> (i32, i32) {
    %c0_i32 = arith.constant 0 : i32
    %c0_i32_0 = arith.constant 0 : i32
    %c0_i32_1 = arith.constant 0 : i32
    return %c0_i32, %c0_i32_0 : i32, i32
  }
  func.func @transform_5(%arg0: i32) -> (i32, i32, i32, i32) {
    %c0_i32 = arith.constant 0 : i32
    %c0_i32_0 = arith.constant 0 : i32
    %c0_i32_1 = arith.constant 0 : i32
    %c0_i32_2 = arith.constant 0 : i32
    return %arg0, %c0_i32, %c0_i32_0, %c0_i32_1 : i32, i32, i32, i32
  }
}

</mosaic_0001>

<bundles_post_ra>
// kernel: tpu_custom_call.1
= control target key start
LH: loop header
LB: loop body
LE: loop exit
PB: predicated region body
PF: predicated region fallthrough
CT: control target
= control target key end

     0   :  { %s4201_s18 = smov 0   ;;  %s5512_s0 = inlined_call_operand.vmem [shape: f32[2,16,16,4], index: 0, kind: input, shape index: {}]   ;;  %s5513_s1 = inlined_call_operand.vmem [shape: f32[3,12,8], index: 1, kind: input, shape index: {}]   ;;  %s5514_s2 = inlined_call_operand.vmem [shape: f32[1,8], index: 2, kind: input, shape index: {}]   ;;  %s5515_s3 = inlined_call_operand.vmem [shape: f32[3,24,8], index: 3, kind: input, shape index: {}]   ;;  %s5516_s4 = inlined_call_operand.vmem [shape: f32[1,8], index: 4, kind: input, shape index: {}]   ;;  %s5517_s5 = inlined_call_operand.vmem [shape: f32[2,16,16,8], index: 5, kind: output, shape index: {}]  }
   0x1 LB: > { %s3242_s19 = sadd.s32 4294967295, %s4164_s18   ;;  %p3246_p0 = scmp.ge.s32.totalorder %s4164_s18, 1  ;;  %s4164_s18 = sphi %s4201_s18, %s15_s18  }
   0x2   : > { %p187_p1 = scmp.lt.s32.totalorder %s4164_s18, 3 }
   0x4   : > { %p188_p2 = pnand %p3246_p0, %p187_p1 }
   0x5   : > { %p4211_p3 = scmp.lt.s32.totalorder (!%p188_p2), %s3242_s19, 1  ;;  %vm225_vm0 = vcmask (!%p188_p2), 31744   ;;  %vm234_vm1 = vcmask (!%p188_p2), 24576   ;;  %v4166_v0 = vmov (!%p188_p2), 0.0   ;;  %v3251_v1 = vld [vmem:[%s5513_s1 + $0x10] sm:$0xff] (!%p188_p2)  ;;  %vm953_vm2 = vcmask (!%p188_p2), 1043456  }
   0x6   : > { %191 = sbr.rel (%p188_p2) target bundleno = 1162 (0x48a), region = 40  ;;  %254 = vst.msk [vmem:[#allocation2 + $0x29] sm:$0x1] (!%p188_p2), %vm234_vm1, %v4166_v0  ;;  %236 = vst.msk [vmem:[#allocation2 + $0x18] sm:$0x1] (!%p188_p2), %vm234_vm1, %v4166_v0  ;;  %vm336_vm3 = vcmask (!%p188_p2), 64512  }
   0x7   : > { %226 = vst.msk [vmem:[#allocation2] sm:$0xff] (!%p188_p2), %vm225_vm0, %v4166_v0  ;;  %227 = vst.msk [vmem:[#allocation2 + $0x8] sm:$0xff] (!%p188_p2), %vm225_vm0, %v4166_v0  ;;  %v3252_v2 = vld [vmem:[%s5513_s1 + $0x18] sm:$0xf] (!%p188_p2)  ;;  %vm4167_vm4 = vmmov (!%p188_p2), 1   ;;  %vm228_vm6 = vcmask (!%p188_p2), 25600  }
   0x8   : > { %231 = vst.msk [vmem:[#allocation2 + $0x198] sm:$0xff] (!%p188_p2), %vm225_vm0, %v4166_v0  ;;  %232 = vst.msk [vmem:[#allocation2 + $0x1a0] sm:$0xff] (!%p188_p2), %vm225_vm0, %v4166_v0  ;;  %v3987_v3 = vpack.c.bf16 (!%p188_p2), %v3252_v2, %v3251_v1  ;;  %s4168_s29 = smov (!%p188_p2), 8   ;;  %s4169_s30 = smov (!%p188_p2), 4   ;;  %vm856_vm7 = vcmask (!%p188_p2), 97280   ;;  %vm339_vm8 = vcmask (!%p188_p2), 58368  }
   0x9   : > { %237 = vst.msk [vmem:[#allocation2 + $0x30] sm:$0x1] (!%p188_p2), %vm234_vm1, %v4166_v0  ;;  %238 = vst.msk [vmem:[#allocation2 + $0x48] sm:$0x1] (!%p188_p2), %vm234_vm1, %v4166_v0  ;;  %vm345_vm9 = vcmask (!%p188_p2), 57344   ;;  %s4170_s24 = smov (!%p188_p2), 16  }
   0xa   : > { %239 = vst.msk [vmem:[#allocation2 + $0x60] sm:$0x1] (!%p188_p2), %vm234_vm1, %v4166_v0  ;;  %240 = vst.msk [vmem:[#allocation2 + $0x78] sm:$0x1] (!%p188_p2), %vm234_vm1, %v4166_v0  ;;  %vm2220_vm10 = vcmask (!%p188_p2), 130048   ;;  %vm2265_vm11 = vcmask (!%p188_p2), 195584  }
   0xb   : > { %241 = vst.msk [vmem:[#allocation2 + $0x90] sm:$0x1] (!%p188_p2), %vm234_vm1, %v4166_v0  ;;  %242 = vst.msk [vmem:[#allocation2 + $0xa8] sm:$0x1] (!%p188_p2), %vm234_vm1, %v4166_v0 }
   0xc   : > { %243 = vst.msk [vmem:[#allocation2 + $0xc0] sm:$0x1] (!%p188_p2), %vm234_vm1, %v4166_v0  ;;  %244 = vst.msk [vmem:[#allocation2 + $0xd8] sm:$0x1] (!%p188_p2), %vm234_vm1, %v4166_v0 }
   0xd   : > { %245 = vst.msk [vmem:[#allocation2 + $0xf0] sm:$0x1] %vm234_vm1, %v4166_v0  ;;  %246 = vst.msk [vmem:[#allocation2 + $0x108] sm:$0x1] %vm234_vm1, %v4166_v0  ;;  %s5522_s19 = smov (!%p4211_p3, %s3242_s19), 1 }
   0xe   : > { %247 = vst.msk [vmem:[#allocation2 + $0x120] sm:$0x1] %vm234_vm1, %v4166_v0  ;;  %248 = vst.msk [vmem:[#allocation2 + $0x138] sm:$0x1] %vm234_vm1, %v4166_v0  ;;  %s3460_s25 = sshll.u32 %s5522_s19, 8 }
   0xf   : > { %249 = vst.msk [vmem:[#allocation2 + $0x150] sm:$0x1] %vm234_vm1, %v4166_v0  ;;  %250 = vst.msk [vmem:[#allocation2 + $0x168] sm:$0x1] %vm234_vm1, %v4166_v0  ;;  %s4323_s28 = scalar_lea.vmem %s5512_s0, %s3460_s25  ;;  %s5412_s17 = scalar_lea.vmem %s5517_s5, %s3460_s25 }
  0x10   : > { %251 = vst.msk [vmem:[#allocation2 + $0x180] sm:$0x1] %vm234_vm1, %v4166_v0  ;;  %255 = vst.msk [vmem:[#allocation2 + $0x41] sm:$0x1] %vm234_vm1, %v4166_v0  ;;  %v271_v5 = vld [vmem:[%s4323_s28] sm:$0xff]  ;;  %v272_v6 = vld [vmem:[%s4323_s28 + $0x8] sm:$0xff] }
  0x11   : > { %256 = vst.msk [vmem:[#allocation2 + $0x59] sm:$0x1] %vm234_vm1, %v4166_v0  ;;  %257 = vst.msk [vmem:[#allocation2 + $0x71] sm:$0x1] %vm234_vm1, %v4166_v0  ;;  %v274_v7 = vld [vmem:[%s4323_s28 + $0x18] sm:$0xff]  ;;  %v273_v8 = vld [vmem:[%s4323_s28 + $0x10] sm:$0xff] }
  0x12   : > { %258 = vst.msk [vmem:[#allocation2 + $0x89] sm:$0x1] %vm234_vm1, %v4166_v0  ;;  %259 = vst.msk [vmem:[#allocation2 + $0xa1] sm:$0x1] %vm234_vm1, %v4166_v0  ;;  %v276_v9 = vld [vmem:[%s4323_s28 + $0x28] sm:$0xff]  ;;  %v275_v10 = vld [vmem:[%s4323_s28 + $0x20] sm:$0xff] }
  0x13   : > { %260 = vst.msk [vmem:[#allocation2 + $0xb9] sm:$0x1] %vm234_vm1, %v4166_v0  ;;  %261 = vst.msk [vmem:[#allocation2 + $0xd1] sm:$0x1] %vm234_vm1, %v4166_v0  ;;  %v278_v11 = vld [vmem:[%s4323_s28 + $0x38] sm:$0xff]  ;;  %v277_v12 = vld [vmem:[%s4323_s28 + $0x30] sm:$0xff] }
  0x14   : > { %262 = vst.msk [vmem:[#allocation2 + $0xe9] sm:$0x1] %vm234_vm1, %v4166_v0  ;;  %263 = vst.msk [vmem:[#allocation2 + $0x101] sm:$0x1] %vm234_vm1, %v4166_v0  ;;  %v280_v13 = vld [vmem:[%s4323_s28 + $0x48] sm:$0xff]  ;;  %v279_v14 = vld [vmem:[%s4323_s28 + $0x40] sm:$0xff] }
  0x15   : > { %264 = vst.msk [vmem:[#allocation2 + $0x119] sm:$0x1] %vm234_vm1, %v4166_v0  ;;  %265 = vst.msk [vmem:[#allocation2 + $0x131] sm:$0x1] %vm234_vm1, %v4166_v0  ;;  %v282_v15 = vld [vmem:[%s4323_s28 + $0x58] sm:$0xff]  ;;  %v281_v16 = vld [vmem:[%s4323_s28 + $0x50] sm:$0xff] }
  0x16   : > { %266 = vst.msk [vmem:[#allocation2 + $0x149] sm:$0x1] %vm234_vm1, %v4166_v0  ;;  %267 = vst.msk [vmem:[#allocation2 + $0x161] sm:$0x1] %vm234_vm1, %v4166_v0  ;;  %v284_v17 = vld [vmem:[%s4323_s28 + $0x68] sm:$0xff]  ;;  %v283_v18 = vld [vmem:[%s4323_s28 + $0x60] sm:$0xff] }
  0x17   : > { %268 = vst.msk [vmem:[#allocation2 + $0x179] sm:$0x1] %vm234_vm1, %v4166_v0  ;;  %269 = vst.msk [vmem:[#allocation2 + $0x191] sm:$0x1] %vm234_vm1, %v4166_v0  ;;  %v286_v19 = vld [vmem:[%s4323_s28 + $0x78] sm:$0xff]  ;;  %v285_v20 = vld [vmem:[%s4323_s28 + $0x70] sm:$0xff] }
  0x18   : > { %235 = vst.msk [vmem:[#allocation2] sm:$0x1] %vm234_vm1, %v4166_v0  ;;  %252 = vst.msk [vmem:[#allocation2 + $0x198] sm:$0x1] %vm234_vm1, %v4166_v0  ;;  %v288_v21 = vld [vmem:[%s4323_s28 + $0x88] sm:$0xff]  ;;  %v287_v22 = vld [vmem:[%s4323_s28 + $0x80] sm:$0xff] }
  0x19   : > { %vm4303_vm5 = vmpackc.low %vm953_vm2, %vm4167_vm4  ;;  %337 = vst.msk [vmem:[#allocation3] sm:$0xff] %vm336_vm3, %v4166_v0  ;;  %v290_v23 = vld [vmem:[%s4323_s28 + $0x98] sm:$0xff]  ;;  %v289_v24 = vld [vmem:[%s4323_s28 + $0x90] sm:$0xff] }
  0x1a   : > { %338 = vst.msk [vmem:[#allocation3 + $0x8] sm:$0xff] %vm336_vm3, %v4166_v0  ;;  %342 = vst.msk [vmem:[#allocation3 + $0x198] sm:$0xff] %vm336_vm3, %v4166_v0  ;;  %3989 = vmatprep.subr.msk.bf16.mxu0 %vm4303_vm5, %v3987_v3  ;;  %v292_v25 = vld [vmem:[%s4323_s28 + $0xa8] sm:$0xff]  ;;  %v291_v26 = vld [vmem:[%s4323_s28 + $0xa0] sm:$0xff] }
  0x1b   : > { %343 = vst.msk [vmem:[#allocation3 + $0x1a0] sm:$0xff] %vm336_vm3, %v4166_v0  ;;  %3992 = vmatpush3.bf16.msk.msra.mxu0 %vm4303_vm5, %v3987_v3  ;;  %v294_v27 = vld [vmem:[%s4323_s28 + $0xb8] sm:$0xff]  ;;  %v293_v28 = vld [vmem:[%s4323_s28 + $0xb0] sm:$0xff]  ;;  %v296_v39 = vld [vmem:[%s4323_s28 + $0xc8] sm:$0xff] }
  0x1c   : > { %304 = vst.msk [vmem:[#allocation2 + $0x19] sm:$0xff] %vm225_vm0, %v271_v5  ;;  %305 = vst.msk [vmem:[#allocation2 + $0x21] sm:$0xff] %vm225_vm0, %v272_v6  ;;  %v295_v40 = vld [vmem:[%s4323_s28 + $0xc0] sm:$0xff]  ;;  %v298_v41 = vld [vmem:[%s4323_s28 + $0xd8] sm:$0xff] }
  0x1d   : > { %307 = vst.msk [vmem:[#allocation2 + $0x39] sm:$0xff] %vm225_vm0, %v274_v7  ;;  %306 = vst.msk [vmem:[#allocation2 + $0x31] sm:$0xff] %vm225_vm0, %v273_v8  ;;  %v297_v43 = vld [vmem:[%s4323_s28 + $0xd0] sm:$0xff]  ;;  %v300_v44 = vld [vmem:[%s4323_s28 + $0xe8] sm:$0xff] }
  0x1e   : > { %229 = vst.msk [vmem:[#allocation2 + $0x10] sm:$0x3] %vm228_vm6, %v4166_v0  ;;  %233 = vst.msk [vmem:[#allocation2 + $0x1a8] sm:$0x3] %vm228_vm6, %v4166_v0  ;;  %v299_v46 = vld [vmem:[%s4323_s28 + $0xe0] sm:$0xff]  ;;  %v302_v47 = vld [vmem:[%s4323_s28 + $0xf8] sm:$0xff] }
  0x1f   : > { %309 = vst.msk [vmem:[#allocation2 + $0x51] sm:$0xff] %vm225_vm0, %v276_v9  ;;  %308 = vst.msk [vmem:[#allocation2 + $0x49] sm:$0xff] %vm225_vm0, %v275_v10  ;;  %v301_v48 = vld [vmem:[%s4323_s28 + $0xf0] sm:$0xff]  ;;  %v851_v5 = vld [vmem:[%s5513_s1] sm:$0xff] }
  0x20   : > { %253 = vst.msk [vmem:[#allocation2 + $0x11] sm:$0x1] %vm234_vm1, %v4166_v0  ;;  %270 = vst.msk [vmem:[#allocation2 + $0x1a9] sm:$0x1] %vm234_vm1, %v4166_v0  ;;  %v852_v6 = vld [vmem:[%s5513_s1 + $0x8] sm:$0xf] }
  0x21   : > { %311 = vst.msk [vmem:[#allocation2 + $0x69] sm:$0xff] %vm225_vm0, %v278_v11  ;;  %310 = vst.msk [vmem:[#allocation2 + $0x61] sm:$0xff] %vm225_vm0, %v277_v12  ;;  %v4433_v9 = vpack.c.bf16 %v852_v6, %v851_v5  ;;  %v454_v6 = vld [vmem:[#allocation2 + $0x2] sm:$0xff] }
  0x22   : > { %313 = vst.msk [vmem:[#allocation2 + $0x81] sm:$0xff] %vm225_vm0, %v280_v13  ;;  %312 = vst.msk [vmem:[#allocation2 + $0x79] sm:$0xff] %vm225_vm0, %v279_v14 }
  0x23   : > { %315 = vst.msk [vmem:[#allocation2 + $0x99] sm:$0xff] %vm225_vm0, %v282_v15  ;;  %314 = vst.msk [vmem:[#allocation2 + $0x91] sm:$0xff] %vm225_vm0, %v281_v16  ;;  %v456_v29 = vld [vmem:[#allocation2 + $0x1a] sm:$0xff]  ;;  %v457_v31 = vld [vmem:[#allocation2 + $0x22] sm:$0xff]  ;;  %3995 = vmatprep.subr.msk.bf16.mxu0 %vm4303_vm5, %v4433_v9 }
  0x24   : > { %317 = vst.msk [vmem:[#allocation2 + $0xb1] sm:$0xff] %vm225_vm0, %v284_v17  ;;  %316 = vst.msk [vmem:[#allocation2 + $0xa9] sm:$0xff] %vm225_vm0, %v283_v18  ;;  %v420_v30 = vld [vmem:[#allocation2 + $0x19] sm:$0xff]  ;;  %674 = vrot.lane.b32.xlu1 %v456_v29, %s4168_s29  ;;  %v421_v32 = vld [vmem:[#allocation2 + $0x21] sm:$0xff] }
  0x25   : > { %319 = vst.msk [vmem:[#allocation2 + $0xc9] sm:$0xff] %vm225_vm0, %v286_v19  ;;  %318 = vst.msk [vmem:[#allocation2 + $0xc1] sm:$0xff] %vm225_vm0, %v285_v20  ;;  %530 = vrot.lane.b32.xlu0 %v420_v30, %s4169_s30  ;;  %v423_v33 = vld [vmem:[#allocation2 + $0x39] sm:$0xff]  ;;  %v422_v34 = vld [vmem:[#allocation2 + $0x31] sm:$0xff] }
  0x26   : > { %321 = vst.msk [vmem:[#allocation2 + $0xe1] sm:$0xff] %vm225_vm0, %v288_v21  ;;  %320 = vst.msk [vmem:[#allocation2 + $0xd9] sm:$0xff] %vm225_vm0, %v287_v22  ;;  %v459_v35 = vld [vmem:[#allocation2 + $0x3a] sm:$0xff]  ;;  %v458_v36 = vld [vmem:[#allocation2 + $0x32] sm:$0xff] }
  0x27   : > { %323 = vst.msk [vmem:[#allocation2 + $0xf9] sm:$0xff] %vm225_vm0, %v290_v23  ;;  %322 = vst.msk [vmem:[#allocation2 + $0xf1] sm:$0xff] %vm225_vm0, %v289_v24  ;;  %v425_v37 = vld [vmem:[#allocation2 + $0x51] sm:$0xff]  ;;  %v424_v38 = vld [vmem:[#allocation2 + $0x49] sm:$0xff] }
  0x28   : > { %325 = vst.msk [vmem:[#allocation2 + $0x111] sm:$0xff] %vm225_vm0, %v292_v25  ;;  %324 = vst.msk [vmem:[#allocation2 + $0x109] sm:$0xff] %vm225_vm0, %v291_v26  ;;  %676 = vrot.lane.b32.xlu1 %v457_v31, %s4168_s29  ;;  %v461_v42 = vld [vmem:[#allocation2 + $0x52] sm:$0xff]  ;;  %v460_v45 = vld [vmem:[#allocation2 + $0x4a] sm:$0xff] }
  0x29   : > { %327 = vst.msk [vmem:[#allocation2 + $0x129] sm:$0xff] %vm225_vm0, %v294_v27  ;;  %326 = vst.msk [vmem:[#allocation2 + $0x121] sm:$0xff] %vm225_vm0, %v293_v28  ;;  %532 = vrot.lane.b32.xlu0 %v421_v32, %s4169_s30  ;;  %v427_v49 = vld [vmem:[#allocation2 + $0x69] sm:$0xff]  ;;  %v426_v50 = vld [vmem:[#allocation2 + $0x61] sm:$0xff] }
  0x2a   : > { %329 = vst.msk [vmem:[#allocation2 + $0x141] sm:$0xff] %vm225_vm0, %v296_v39  ;;  %328 = vst.msk [vmem:[#allocation2 + $0x139] sm:$0xff] %vm225_vm0, %v295_v40  ;;  %v463_v51 = vld [vmem:[#allocation2 + $0x6a] sm:$0xff]  ;;  %v462_v52 = vld [vmem:[#allocation2 + $0x62] sm:$0xff] }
  0x2b   : > { %331 = vst.msk [vmem:[#allocation2 + $0x159] sm:$0xff] %vm225_vm0, %v298_v41  ;;  %330 = vst.msk [vmem:[#allocation2 + $0x151] sm:$0xff] %vm225_vm0, %v297_v43  ;;  %v429_v53 = vld [vmem:[#allocation2 + $0x81] sm:$0xff]  ;;  %v428_v54 = vld [vmem:[#allocation2 + $0x79] sm:$0xff] }
  0x2c   : > { %536 = vrot.lane.b32.xlu1 %v423_v33, %s4169_s30  ;;  %333 = vst.msk [vmem:[#allocation2 + $0x171] sm:$0xff] %vm225_vm0, %v300_v44  ;;  %332 = vst.msk [vmem:[#allocation2 + $0x169] sm:$0xff] %vm225_vm0, %v299_v46  ;;  %v465_v55 = vld [vmem:[#allocation2 + $0x82] sm:$0xff]  ;;  %v464_v56 = vld [vmem:[#allocation2 + $0x7a] sm:$0xff] }
  0x2d   : > { %534 = vrot.lane.b32.xlu0 %v422_v34, %s4169_s30  ;;  %335 = vst.msk [vmem:[#allocation2 + $0x189] sm:$0xff] %vm225_vm0, %v302_v47  ;;  %334 = vst.msk [vmem:[#allocation2 + $0x181] sm:$0xff] %vm225_vm0, %v301_v48  ;;  %v431_v57 = vld [vmem:[#allocation2 + $0x99] sm:$0xff]  ;;  %v430_v58 = vld [vmem:[#allocation2 + $0x91] sm:$0xff] }
  0x2e   : > { %v467_v59 = vld [vmem:[#allocation2 + $0x9a] sm:$0xff]  ;;  %v466_v60 = vld [vmem:[#allocation2 + $0x92] sm:$0xff]  ;;  %v432_v62 = vld [vmem:[#allocation2 + $0xa9] sm:$0xff]  ;;  %340 = vst.msk [vmem:[#allocation3 + $0x10] sm:$0x3] %vm339_vm8, %v4166_v0 }
  0x2f   : > { %v433_v61 = vld [vmem:[#allocation2 + $0xb1] sm:$0xff]  ;;  %v435_v2 = vld [vmem:[#allocation2 + $0xc9] sm:$0xff]  ;;  %v434_v3 = vld [vmem:[#allocation2 + $0xc1] sm:$0xff]  ;;  %344 = vst.msk [vmem:[#allocation3 + $0x1a8] sm:$0x3] %vm339_vm8, %v4166_v0 }
  0x30   : > { %680 = vrot.lane.b32.xlu1 %v459_v35, %s4168_s29  ;;  %v469_v63 = vld [vmem:[#allocation2 + $0xb2] sm:$0xff]  ;;  %v468_v1 = vld [vmem:[#allocation2 + $0xaa] sm:$0xff]  ;;  %v470_v8 = vld [vmem:[#allocation2 + $0xc2] sm:$0xff]  ;;  %365 = vst.msk [vmem:[#allocation3 + $0x29] sm:$0x1] %vm345_vm9, %v4166_v0 }
  0x31   : > { %678 = vrot.lane.b32.xlu0 %v458_v36, %s4168_s29  ;;  %v471_v7 = vld [vmem:[#allocation2 + $0xca] sm:$0xff]  ;;  %v437_v10 = vld [vmem:[#allocation2 + $0xe1] sm:$0xff]  ;;  %v436_v11 = vld [vmem:[#allocation2 + $0xd9] sm:$0xff]  ;;  %346 = vst.msk [vmem:[#allocation3] sm:$0x1] %vm345_vm9, %v4166_v0 }
  0x32   : > { %v473_v12 = vld [vmem:[#allocation2 + $0xe2] sm:$0xff]  ;;  %v472_v13 = vld [vmem:[#allocation2 + $0xda] sm:$0xff]  ;;  %v438_v15 = vld [vmem:[#allocation2 + $0xf1] sm:$0xff]  ;;  %347 = vst.msk [vmem:[#allocation3 + $0x18] sm:$0x1] %vm345_vm9, %v4166_v0 }
  0x33   : > { %v439_v14 = vld [vmem:[#allocation2 + $0xf9] sm:$0xff]  ;;  %v441_v18 = vld [vmem:[#allocation2 + $0x111] sm:$0xff]  ;;  %v440_v19 = vld [vmem:[#allocation2 + $0x109] sm:$0xff]  ;;  %348 = vst.msk [vmem:[#allocation3 + $0x30] sm:$0x1] %vm345_vm9, %v4166_v0 }
  0x34   : > { %540 = vrot.lane.b32.xlu1 %v425_v37, %s4169_s30  ;;  %v475_v16 = vld [vmem:[#allocation2 + $0xfa] sm:$0xff]  ;;  %v474_v17 = vld [vmem:[#allocation2 + $0xf2] sm:$0xff]  ;;  %v476_v21 = vld [vmem:[#allocation2 + $0x10a] sm:$0xff]  ;;  %349 = vst.msk [vmem:[#allocation3 + $0x48] sm:$0x1] %vm345_vm9, %v4166_v0 }
  0x35   : > { %538 = vrot.lane.b32.xlu0 %v424_v38, %s4169_s30  ;;  %v477_v20 = vld [vmem:[#allocation2 + $0x112] sm:$0xff]  ;;  %v443_v22 = vld [vmem:[#allocation2 + $0x129] sm:$0xff]  ;;  %v442_v23 = vld [vmem:[#allocation2 + $0x121] sm:$0xff]  ;;  %350 = vst.msk [vmem:[#allocation3 + $0x60] sm:$0x1] %vm345_vm9, %v4166_v0 }
  0x36   : > { %v479_v24 = vld [vmem:[#allocation2 + $0x12a] sm:$0xff]  ;;  %v478_v25 = vld [vmem:[#allocation2 + $0x122] sm:$0xff]  ;;  %v444_v27 = vld [vmem:[#allocation2 + $0x139] sm:$0xff]  ;;  %351 = vst.msk [vmem:[#allocation3 + $0x78] sm:$0x1] %vm345_vm9, %v4166_v0 }
  0x37   : > { %v445_v26 = vld [vmem:[#allocation2 + $0x141] sm:$0xff]  ;;  %v447_v30 = vld [vmem:[#allocation2 + $0x159] sm:$0xff]  ;;  %v446_v31 = vld [vmem:[#allocation2 + $0x151] sm:$0xff]  ;;  %352 = vst.msk [vmem:[#allocation3 + $0x90] sm:$0x1] %vm345_vm9, %v4166_v0 }
  0x38   : > { %684 = vrot.lane.b32.xlu1 %v461_v42, %s4168_s29  ;;  %v481_v28 = vld [vmem:[#allocation2 + $0x142] sm:$0xff]  ;;  %v480_v29 = vld [vmem:[#allocation2 + $0x13a] sm:$0xff]  ;;  %v482_v33 = vld [vmem:[#allocation2 + $0x152] sm:$0xff]  ;;  %353 = vst.msk [vmem:[#allocation3 + $0xa8] sm:$0x1] %vm345_vm9, %v4166_v0 }
  0x39   : > { %682 = vrot.lane.b32.xlu0 %v460_v45, %s4168_s29  ;;  %v483_v32 = vld [vmem:[#allocation2 + $0x15a] sm:$0xff]  ;;  %v449_v34 = vld [vmem:[#allocation2 + $0x171] sm:$0xff]  ;;  %v448_v35 = vld [vmem:[#allocation2 + $0x169] sm:$0xff]  ;;  %354 = vst.msk [vmem:[#allocation3 + $0xc0] sm:$0x1] %vm345_vm9, %v4166_v0 }
  0x3a   : > { %v384_v36 = vld [vmem:[#allocation2 + $0x18] sm:$0xff]  ;;  %v484_v38 = vld [vmem:[#allocation2 + $0x16a] sm:$0xff]  ;;  %v385_v43 = vld [vmem:[#allocation2 + $0x20] sm:$0xff]  ;;  %355 = vst.msk [vmem:[#allocation3 + $0xd8] sm:$0x1] %vm345_vm9, %v4166_v0 }
  0x3b   : > { %v485_v37 = vld [vmem:[#allocation2 + $0x172] sm:$0xff]  ;;  %v451_v44 = vld [vmem:[#allocation2 + $0x189] sm:$0xff]  ;;  %v450_v45 = vld [vmem:[#allocation2 + $0x181] sm:$0xff]  ;;  %356 = vst.msk [vmem:[#allocation3 + $0xf0] sm:$0x1] %vm345_vm9, %v4166_v0 }
  0x3c   : > { %544 = vrot.lane.b32.xlu1 %v427_v49, %s4169_s30  ;;  %v455_v5 = vld [vmem:[#allocation2 + $0xa] sm:$0xff]  ;;  %357 = vst.msk [vmem:[#allocation3 + $0x108] sm:$0x1] %vm345_vm9, %v4166_v0  ;;  %358 = vst.msk [vmem:[#allocation3 + $0x120] sm:$0x1] %vm345_vm9, %v4166_v0 }
  0x3d   : > { %542 = vrot.lane.b32.xlu0 %v426_v50, %s4169_s30  ;;  %v3319_v50 = vld [vmem:[%s5513_s1 + $0x20] sm:$0xff]  ;;  %359 = vst.msk [vmem:[#allocation3 + $0x138] sm:$0x1] %vm345_vm9, %v4166_v0  ;;  %360 = vst.msk [vmem:[#allocation3 + $0x150] sm:$0x1] %vm345_vm9, %v4166_v0 }
  0x3e   : > { %361 = vst.msk [vmem:[#allocation3 + $0x168] sm:$0x1] %vm345_vm9, %v4166_v0  ;;  %362 = vst.msk [vmem:[#allocation3 + $0x180] sm:$0x1] %vm345_vm9, %v4166_v0 }
  0x3f   : > { %363 = vst.msk [vmem:[#allocation3 + $0x198] sm:$0x1] %vm345_vm9, %v4166_v0  ;;  %364 = vst.msk [vmem:[#allocation3 + $0x11] sm:$0x1] %vm345_vm9, %v4166_v0 }
  0x40   : > { %688 = vrot.lane.b32.xlu1 %v463_v51, %s4168_s29  ;;  %v3320_v51 = vld [vmem:[%s5513_s1 + $0x28] sm:$0xf]  ;;  %366 = vst.msk [vmem:[#allocation3 + $0x41] sm:$0x1] %vm345_vm9, %v4166_v0  ;;  %367 = vst.msk [vmem:[#allocation3 + $0x59] sm:$0x1] %vm345_vm9, %v4166_v0 }
  0x41   : > { %686 = vrot.lane.b32.xlu0 %v462_v52, %s4168_s29  ;;  %v487_v52 = vld [vmem:[#allocation2 + $0x18a] sm:$0xff]  ;;  %368 = vst.msk [vmem:[#allocation3 + $0x71] sm:$0x1] %vm345_vm9, %v4166_v0  ;;  %369 = vst.msk [vmem:[#allocation3 + $0x89] sm:$0x1] %vm345_vm9, %v4166_v0 }
  0x42   : > { %370 = vst.msk [vmem:[#allocation3 + $0xa1] sm:$0x1] %vm345_vm9, %v4166_v0  ;;  %371 = vst.msk [vmem:[#allocation3 + $0xb9] sm:$0x1] %vm345_vm9, %v4166_v0 }
  0x43   : > { %372 = vst.msk [vmem:[#allocation3 + $0xd1] sm:$0x1] %vm345_vm9, %v4166_v0  ;;  %373 = vst.msk [vmem:[#allocation3 + $0xe9] sm:$0x1] %vm345_vm9, %v4166_v0 }
  0x44   : > { %548 = vrot.lane.b32.xlu1 %v429_v53, %s4169_s30  ;;  %v486_v53 = vld [vmem:[#allocation2 + $0x182] sm:$0xff]  ;;  %374 = vst.msk [vmem:[#allocation3 + $0x101] sm:$0x1] %vm345_vm9, %v4166_v0  ;;  %375 = vst.msk [vmem:[#allocation3 + $0x119] sm:$0x1] %vm345_vm9, %v4166_v0 }
  0x45   : > { %546 = vrot.lane.b32.xlu0 %v428_v54, %s4169_s30  ;;  %v4488_v54 = vpack.c.bf16 %v3320_v51, %v3319_v50  ;;  %376 = vst.msk [vmem:[#allocation3 + $0x131] sm:$0x1] %vm345_vm9, %v4166_v0  ;;  %377 = vst.msk [vmem:[#allocation3 + $0x149] sm:$0x1] %vm345_vm9, %v4166_v0 }
  0x46   : > { %378 = vst.msk [vmem:[#allocation3 + $0x161] sm:$0x1] %vm345_vm9, %v4166_v0  ;;  %379 = vst.msk [vmem:[#allocation3 + $0x179] sm:$0x1] %vm345_vm9, %v4166_v0 }
  0x47   : > { %380 = vst.msk [vmem:[#allocation3 + $0x191] sm:$0x1] %vm345_vm9, %v4166_v0  ;;  %381 = vst.msk [vmem:[#allocation3 + $0x1a9] sm:$0x1] %vm345_vm9, %v4166_v0 }
  0x48   : > { %692 = vrot.lane.b32.xlu1 %v465_v55, %s4168_s29 }
  0x49   : > { %690 = vrot.lane.b32.xlu0 %v464_v56, %s4168_s29 }
  0x4c   : > { %552 = vrot.lane.b32.xlu1 %v431_v57, %s4169_s30  ;;  %v387_v57 = vld [vmem:[#allocation2 + $0x38] sm:$0xff] }
  0x4d   : > { %550 = vrot.lane.b32.xlu0 %v430_v58, %s4169_s30  ;;  %v386_v58 = vld [vmem:[#allocation2 + $0x30] sm:$0xff] }
  0x50   : > { %696 = vrot.lane.b32.xlu1 %v467_v59, %s4168_s29  ;;  %v419_v59 = vld [vmem:[#allocation2 + $0x9] sm:$0xff] }
  0x51   : > { %694 = vrot.lane.b32.xlu0 %v466_v60, %s4168_s29  ;;  %v418_v60 = vld [vmem:[#allocation2 + $0x1] sm:$0xff] }
  0x54   : > { %556 = vrot.lane.b32.xlu1 %v433_v61, %s4169_s30 }
  0x55   : > { %554 = vrot.lane.b32.xlu0 %v432_v62, %s4169_s30 }
  0x58   : > { %700 = vrot.lane.b32.xlu1 %v469_v63, %s4168_s29 }
  0x59   : > { %698 = vrot.lane.b32.xlu0 %v468_v1, %s4168_s29 }
  0x5c   : > { %560 = vrot.lane.b32.xlu1 %v435_v2, %s4169_s30 }
  0x5d   : > { %558 = vrot.lane.b32.xlu0 %v434_v3, %s4169_s30 }
  0x60   : > { %704 = vrot.lane.b32.xlu1 %v471_v7, %s4168_s29 }
  0x61   : > { %702 = vrot.lane.b32.xlu0 %v470_v8, %s4168_s29 }
  0x64   : > { %564 = vrot.lane.b32.xlu1 %v437_v10, %s4169_s30  ;;  %v388_v10 = vld [vmem:[#allocation2 + $0x48] sm:$0xff] }
  0x65   : > { %562 = vrot.lane.b32.xlu0 %v436_v11, %s4169_s30  ;;  %v452_v11 = vld [vmem:[#allocation2 + $0x199] sm:$0xff] }
  0x68   : > { %708 = vrot.lane.b32.xlu1 %v473_v12, %s4168_s29 }
  0x69   : > { %706 = vrot.lane.b32.xlu0 %v472_v13, %s4168_s29 }
  0x6c   : > { %568 = vrot.lane.b32.xlu1 %v439_v14, %s4169_s30 }
  0x6d   : > { %566 = vrot.lane.b32.xlu0 %v438_v15, %s4169_s30 }
  0x70   : > { %712 = vrot.lane.b32.xlu1 %v475_v16, %s4168_s29  ;;  %v453_v16 = vld [vmem:[#allocation2 + $0x1a1] sm:$0xff] }
  0x71   : > { %710 = vrot.lane.b32.xlu0 %v474_v17, %s4168_s29 }
  0x74   : > { %572 = vrot.lane.b32.xlu1 %v441_v18, %s4169_s30 }
  0x75   : > { %570 = vrot.lane.b32.xlu0 %v440_v19, %s4169_s30  ;;  %v488_v19 = vld [vmem:[#allocation2 + $0x19a] sm:$0xff] }
  0x78   : > { %716 = vrot.lane.b32.xlu1 %v477_v20, %s4168_s29 }
  0x79   : > { %714 = vrot.lane.b32.xlu0 %v476_v21, %s4168_s29 }
  0x7c   : > { %576 = vrot.lane.b32.xlu1 %v443_v22, %s4169_s30  ;;  %v489_v22 = vld [vmem:[#allocation2 + $0x1a2] sm:$0xff] }
  0x7d   : > { %574 = vrot.lane.b32.xlu0 %v442_v23, %s4169_s30  ;;  %v391_v23 = vld [vmem:[#allocation2 + $0x68] sm:$0xff] }
  0x80   : > { %720 = vrot.lane.b32.xlu1 %v479_v24, %s4168_s29  ;;  %v390_v24 = vld [vmem:[#allocation2 + $0x60] sm:$0xff] }
  0x81   : > { %718 = vrot.lane.b32.xlu0 %v478_v25, %s4168_s29 }
  0x84   : > { %580 = vrot.lane.b32.xlu1 %v445_v26, %s4169_s30 }
  0x85   : > { %578 = vrot.lane.b32.xlu0 %v444_v27, %s4169_s30 }
  0x88   : > { %724 = vrot.lane.b32.xlu1 %v481_v28, %s4168_s29 }
  0x89   : > { %722 = vrot.lane.b32.xlu0 %v480_v29, %s4168_s29 }
  0x8c   : > { %584 = vrot.lane.b32.xlu1 %v447_v30, %s4169_s30 }
  0x8d   : > { %582 = vrot.lane.b32.xlu0 %v446_v31, %s4169_s30 }
  0x90   : > { %728 = vrot.lane.b32.xlu1 %v483_v32, %s4168_s29 }
  0x91   : > { %726 = vrot.lane.b32.xlu0 %v482_v33, %s4168_s29  ;;  %v393_v33 = vld [vmem:[#allocation2 + $0x80] sm:$0xff] }
  0x94   : > { %588 = vrot.lane.b32.xlu1 %v449_v34, %s4169_s30  ;;  %v392_v34 = vld [vmem:[#allocation2 + $0x78] sm:$0xff] }
  0x95   : > { %586 = vrot.lane.b32.xlu0 %v448_v35, %s4169_s30 }
  0x96   : > { %v675_v39 = vpop.permute.xlu1 %674 }
  0x97   : > { %v531_v40 = vpop.permute.xlu0 %530 }
  0x98   : > { %v780_v41 = vsel %vm225_vm0, %v384_v36, %v531_v40  ;;  %732 = vrot.lane.b32.xlu1 %v485_v37, %s4168_s29 }
  0x99   : > { %730 = vrot.lane.b32.xlu0 %v484_v38, %s4168_s29  ;;  %v4470_v42 = vsel %vm336_vm3, %v780_v41, %v675_v39 }
  0x9a   : > { %3673 = vmatprep.mubr.msk.f32.mxu0 %vm856_vm7, %v4470_v42  ;;  %v677_v46 = vpop.permute.xlu1 %676 }
  0x9b   : > { %v533_v47 = vpop.permute.xlu0 %532 }
  0x9c   : > { %v781_v48 = vsel %vm225_vm0, %v385_v43, %v533_v47  ;;  %592 = vrot.lane.b32.xlu1 %v451_v44, %s4169_s30  ;;  %v395_v44 = vld [vmem:[#allocation2 + $0x98] sm:$0xff] }
  0x9d   : > { %590 = vrot.lane.b32.xlu0 %v450_v45, %s4169_s30  ;;  %v4478_v49 = vsel %vm336_vm3, %v781_v48, %v677_v46  ;;  %v394_v45 = vld [vmem:[#allocation2 + $0x90] sm:$0xff] }
  0x9e   : > { %3674 = vmatmul.mubr.msk.f32.vlgmr.msra.gmra.mrb[0].mxu0 %vm856_vm7, %v4478_v49  ;;  %v537_v55 = vpop.permute.xlu1 %536 }
  0x9f   : > { %v535_v56 = vpop.permute.xlu0 %534  ;;  %3998 = vmatpush3.bf16.msk.msra.mxu0 %vm4303_vm5, %v4433_v9  ;;  %v783_v61 = vsel %vm225_vm0, %v387_v57, %v537_v55  ;;  %v389_v9 = vld [vmem:[#allocation2 + $0x50] sm:$0xff]  ;;  %v396_v57 = vld [vmem:[#allocation2 + $0xa8] sm:$0xff] }
  0xa0   : > { %4001 = vmatprep.subr.msk.bf16.mxu0 %vm4303_vm5, %v4488_v54  ;;  %736 = vrot.lane.b32.xlu1 %v487_v52, %s4168_s29  ;;  %v782_v62 = vsel %vm225_vm0, %v386_v58, %v535_v56  ;;  %v397_v56 = vld [vmem:[#allocation2 + $0xb0] sm:$0xff] }
  0xa1   : > { %734 = vrot.lane.b32.xlu0 %v486_v53, %s4168_s29 }
  0xa2   : > { %v681_v63 = vpop.permute.xlu1 %680 }
  0xa3   : > { %v679_v1 = vpop.permute.xlu0 %678  ;;  %v4501_v2 = vsel %vm336_vm3, %v783_v61, %v681_v63 }
  0xa4   : > { %v4504_v3 = vsel %vm336_vm3, %v782_v62, %v679_v1  ;;  %528 = vrot.lane.b32.xlu1 %v419_v59, %s4169_s30 }
  0xa5   : > { %526 = vrot.lane.b32.xlu0 %v418_v60, %s4169_s30  ;;  %3676 = vmatprep.mubr.msk.f32.mxu0 %vm856_vm7, %v4504_v3 }
  0xa6   : > { %3677 = vmatmul.mubr.msk.f32.gmra.mrb[2].mxu0 %vm856_vm7, %v4501_v2  ;;  %v541_v7 = vpop.permute.xlu1 %540 }
  0xa7   : > { %v539_v8 = vpop.permute.xlu0 %538  ;;  %v785_v12 = vsel %vm225_vm0, %v389_v9, %v541_v7  ;;  %v398_v7 = vld [vmem:[#allocation2 + $0xc0] sm:$0xff] }
  0xa8   : > { %672 = vrot.lane.b32.xlu1 %v455_v5, %s4168_s29  ;;  %v784_v13 = vsel %vm225_vm0, %v388_v10, %v539_v8 }
  0xa9   : > { %670 = vrot.lane.b32.xlu0 %v454_v6, %s4168_s29  ;;  %v399_v6 = vld [vmem:[#allocation2 + $0xc8] sm:$0xff] }
  0xaa   : > { %v685_v14 = vpop.permute.xlu1 %684 }
  0xab   : > { %v683_v15 = vpop.permute.xlu0 %682  ;;  %v4517_v17 = vsel %vm336_vm3, %v785_v12, %v685_v14 }
  0xac   : > { %v4520_v18 = vsel %vm336_vm3, %v784_v13, %v683_v15  ;;  %596 = vrot.lane.b32.xlu1 %v453_v16, %s4169_s30  ;;  %v401_v16 = vld [vmem:[#allocation2 + $0xe0] sm:$0xff] }
  0xad   : > { %3679 = vmatprep.mubr.msk.f32.mxu0 %vm856_vm7, %v4520_v18  ;;  %594 = vrot.lane.b32.xlu0 %v452_v11, %s4169_s30 }
  0xae   : > { %3680 = vmatmul.mubr.msk.f32.gmra.mrb[4].mxu0 %vm856_vm7, %v4517_v17  ;;  %v545_v20 = vpop.permute.xlu1 %544 }
  0xaf   : > { %v543_v21 = vpop.permute.xlu0 %542  ;;  %v787_v25 = vsel %vm225_vm0, %v391_v23, %v545_v20 }
  0xb0   : > { %740 = vrot.lane.b32.xlu1 %v489_v22, %s4168_s29  ;;  %v786_v26 = vsel %vm225_vm0, %v390_v24, %v543_v21 }
  0xb1   : > { %738 = vrot.lane.b32.xlu0 %v488_v19, %s4168_s29  ;;  %v400_v19 = vld [vmem:[#allocation2 + $0xd8] sm:$0xff] }
  0xb2   : > { %v689_v27 = vpop.permute.xlu1 %688 }
  0xb3   : > { %v687_v28 = vpop.permute.xlu0 %686  ;;  %v4533_v29 = vsel %vm336_vm3, %v787_v25, %v689_v27 }
  0xb4   : > { %v4536_v30 = vsel %vm336_vm3, %v786_v26, %v687_v28  ;;  %v403_v28 = vld [vmem:[#allocation2 + $0xf8] sm:$0xff] }
  0xb5   : > { %3682 = vmatprep.mubr.msk.f32.mxu0 %vm856_vm7, %v4536_v30 }
  0xb6   : > { %3683 = vmatmul.mubr.msk.f32.gmra.mrb[6].mxu0 %vm856_vm7, %v4533_v29  ;;  %v549_v31 = vpop.permute.xlu1 %548 }
  0xb7   : > { %v547_v32 = vpop.permute.xlu0 %546  ;;  %v789_v35 = vsel %vm225_vm0, %v393_v33, %v549_v31  ;;  %v402_v31 = vld [vmem:[#allocation2 + $0xf0] sm:$0xff] }
  0xb8   : > { %v788_v36 = vsel %vm225_vm0, %v392_v34, %v547_v32 }
  0xba   : > { %v693_v37 = vpop.permute.xlu1 %692 }
  0xbb   : > { %v691_v38 = vpop.permute.xlu0 %690  ;;  %v4545_v39 = vsel %vm336_vm3, %v789_v35, %v693_v37 }
  0xbc   : > { %v4548_v40 = vsel %vm336_vm3, %v788_v36, %v691_v38 }
  0xbd   : > { %3685 = vmatprep.mubr.msk.f32.mxu0 %vm856_vm7, %v4548_v40 }
  0xbe   : > { %3686 = vmatmul.mubr.msk.f32.gmra.mrb[8].mxu0 %vm856_vm7, %v4545_v39  ;;  %v553_v41 = vpop.permute.xlu1 %552 }
  0xbf   : > { %v551_v43 = vpop.permute.xlu0 %550  ;;  %v791_v46 = vsel %vm225_vm0, %v395_v44, %v553_v41  ;;  %v404_v44 = vld [vmem:[#allocation2 + $0x108] sm:$0xff] }
  0xc0   : > { %v790_v47 = vsel %vm225_vm0, %v394_v45, %v551_v43  ;;  %v405_v43 = vld [vmem:[#allocation2 + $0x110] sm:$0xff] }
  0xc2   : > { %v697_v48 = vpop.permute.xlu1 %696 }
  0xc3   : > { %v695_v50 = vpop.permute.xlu0 %694  ;;  %v4557_v51 = vsel %vm336_vm3, %v791_v46, %v697_v48 }
  0xc4   : > { %v4560_v52 = vsel %vm336_vm3, %v790_v47, %v695_v50 }
  0xc5   : > { %3688 = vmatprep.mubr.msk.f32.mxu0 %vm856_vm7, %v4560_v52 }
  0xc6   : > { %3689 = vmatmul.mubr.msk.f32.gmra.mrb[10].mxu0 %vm856_vm7, %v4557_v51  ;;  %v557_v53 = vpop.permute.xlu1 %556 }
  0xc7   : > { %v555_v55 = vpop.permute.xlu0 %554  ;;  %v793_v58 = vsel %vm225_vm0, %v397_v56, %v557_v53 }
  0xc8   : > { %v792_v59 = vsel %vm225_vm0, %v396_v57, %v555_v55  ;;  %v407_v57 = vld [vmem:[#allocation2 + $0x128] sm:$0xff] }
  0xca   : > { %v701_v60 = vpop.permute.xlu1 %700 }
  0xcb   : > { %v699_v61 = vpop.permute.xlu0 %698  ;;  %v4569_v62 = vsel %vm336_vm3, %v793_v58, %v701_v60  ;;  %v406_v58 = vld [vmem:[#allocation2 + $0x120] sm:$0xff] }
  0xcc   : > { %v4572_v63 = vsel %vm336_vm3, %v792_v59, %v699_v61 }
  0xcd   : > { %3691 = vmatprep.mubr.msk.f32.mxu0 %vm856_vm7, %v4572_v63 }
  0xce   : > { %3692 = vmatmul.mubr.msk.f32.gmra.mrb[12].mxu0 %vm856_vm7, %v4569_v62  ;;  %v561_v1 = vpop.permute.xlu1 %560 }
  0xcf   : > { %v559_v5 = vpop.permute.xlu0 %558  ;;  %v795_v8 = vsel %vm225_vm0, %v399_v6, %v561_v1 }
  0xd0   : > { %v794_v9 = vsel %vm225_vm0, %v398_v7, %v559_v5 }
  0xd2   : > { %v705_v10 = vpop.permute.xlu1 %704 }
  0xd3   : > { %v703_v11 = vpop.permute.xlu0 %702  ;;  %v4581_v12 = vsel %vm336_vm3, %v795_v8, %v705_v10  ;;  %v408_v10 = vld [vmem:[#allocation2 + $0x138] sm:$0xff] }
  0xd4   : > { %v4584_v13 = vsel %vm336_vm3, %v794_v9, %v703_v11  ;;  %v409_v9 = vld [vmem:[#allocation2 + $0x140] sm:$0xff] }
  0xd5   : > { %3694 = vmatprep.mubr.msk.f32.mxu0 %vm856_vm7, %v4584_v13 }
  0xd6   : > { %3695 = vmatmul.mubr.msk.f32.gmra.mrb[14].mxu0 %vm856_vm7, %v4581_v12  ;;  %v565_v14 = vpop.permute.xlu1 %564 }
  0xd7   : > { %v563_v15 = vpop.permute.xlu0 %562  ;;  %v797_v20 = vsel %vm225_vm0, %v401_v16, %v565_v14 }
  0xd8   : > { %v796_v21 = vsel %vm225_vm0, %v400_v19, %v563_v15 }
  0xda   : > { %v709_v22 = vpop.permute.xlu1 %708 }
  0xdb   : > { %v707_v23 = vpop.permute.xlu0 %706  ;;  %v4593_v24 = vsel %vm336_vm3, %v797_v20, %v709_v22 }
  0xdc   : > { %v4596_v25 = vsel %vm336_vm3, %v796_v21, %v707_v23  ;;  %v411_v23 = vld [vmem:[#allocation2 + $0x158] sm:$0xff] }
  0xdd   : > { %3697 = vmatprep.mubr.msk.f32.mxu0 %vm856_vm7, %v4596_v25 }
  0xde   : > { %3698 = vmatmul.mubr.msk.f32.gmra.mrb[16].mxu0 %vm856_vm7, %v4593_v24  ;;  %v569_v26 = vpop.permute.xlu1 %568 }
  0xdf   : > { %v567_v27 = vpop.permute.xlu0 %566  ;;  %v799_v32 = vsel %vm225_vm0, %v403_v28, %v569_v26  ;;  %v410_v26 = vld [vmem:[#allocation2 + $0x150] sm:$0xff] }
  0xe0   : > { %v798_v33 = vsel %vm225_vm0, %v402_v31, %v567_v27 }
  0xe2   : > { %v713_v34 = vpop.permute.xlu1 %712 }
  0xe3   : > { %v711_v35 = vpop.permute.xlu0 %710  ;;  %v4605_v36 = vsel %vm336_vm3, %v799_v32, %v713_v34 }
  0xe4   : > { %v4608_v37 = vsel %vm336_vm3, %v798_v33, %v711_v35 }
  0xe5   : > { %3700 = vmatprep.mubr.msk.f32.mxu0 %vm856_vm7, %v4608_v37 }
  0xe6   : > { %3701 = vmatmul.mubr.msk.f32.gmra.mrb[18].mxu0 %vm856_vm7, %v4605_v36  ;;  %v573_v38 = vpop.permute.xlu1 %572 }
  0xe7   : > { %v571_v41 = vpop.permute.xlu0 %570  ;;  %v801_v45 = vsel %vm225_vm0, %v405_v43, %v573_v38  ;;  %v412_v43 = vld [vmem:[#allocation2 + $0x168] sm:$0xff] }
  0xe8   : > { %v800_v46 = vsel %vm225_vm0, %v404_v44, %v571_v41  ;;  %v413_v41 = vld [vmem:[#allocation2 + $0x170] sm:$0xff] }
  0xea   : > { %v717_v47 = vpop.permute.xlu1 %716 }
  0xeb   : > { %v715_v48 = vpop.permute.xlu0 %714  ;;  %v4617_v50 = vsel %vm336_vm3, %v801_v45, %v717_v47 }
  0xec   : > { %v4620_v53 = vsel %vm336_vm3, %v800_v46, %v715_v48 }
  0xed   : > { %3703 = vmatprep.mubr.msk.f32.mxu0 %vm856_vm7, %v4620_v53 }
  0xee   : > { %3704 = vmatmul.mubr.msk.f32.gmra.mrb[20].mxu0 %vm856_vm7, %v4617_v50  ;;  %v577_v55 = vpop.permute.xlu1 %576 }
  0xef   : > { %v575_v56 = vpop.permute.xlu0 %574  ;;  %v803_v59 = vsel %vm225_vm0, %v407_v57, %v577_v55 }
  0xf0   : > { %v802_v60 = vsel %vm225_vm0, %v406_v58, %v575_v56  ;;  %v415_v58 = vld [vmem:[#allocation2 + $0x188] sm:$0xff] }
  0xf2   : > { %v721_v61 = vpop.permute.xlu1 %720 }
  0xf3   : > { %v719_v1 = vpop.permute.xlu0 %718  ;;  %v4629_v5 = vsel %vm336_vm3, %v803_v59, %v721_v61  ;;  %v414_v59 = vld [vmem:[#allocation2 + $0x180] sm:$0xff] }
  0xf4   : > { %v4632_v6 = vsel %vm336_vm3, %v802_v60, %v719_v1 }
  0xf5   : > { %3706 = vmatprep.mubr.msk.f32.mxu0 %vm856_vm7, %v4632_v6 }
  0xf6   : > { %3707 = vmatmul.mubr.msk.f32.gmra.mrb[22].mxu0 %vm856_vm7, %v4629_v5  ;;  %v581_v7 = vpop.permute.xlu1 %580 }
  0xf7   : > { %v579_v8 = vpop.permute.xlu0 %578  ;;  %v805_v11 = vsel %vm225_vm0, %v409_v9, %v581_v7 }
  0xf8   : > { %v804_v14 = vsel %vm225_vm0, %v408_v10, %v579_v8 }
  0xfa   : > { %v725_v15 = vpop.permute.xlu1 %724 }
  0xfb   : > { %v723_v16 = vpop.permute.xlu0 %722  ;;  %v4641_v19 = vsel %vm336_vm3, %v805_v11, %v725_v15  ;;  %v382_v15 = vld [vmem:[#allocation2] sm:$0xff] }
  0xfc   : > { %v4644_v20 = vsel %vm336_vm3, %v804_v14, %v723_v16  ;;  %v383_v14 = vld [vmem:[#allocation2 + $0x8] sm:$0xff] }
  0xfd   : > { %3709 = vmatprep.mubr.msk.f32.mxu0 %vm856_vm7, %v4644_v20 }
  0xfe   : > { %3710 = vmatmul.mubr.msk.f32.gmra.mrb[24].mxu0 %vm856_vm7, %v4641_v19  ;;  %v585_v21 = vpop.permute.xlu1 %584 }
  0xff   : > { %v583_v22 = vpop.permute.xlu0 %582  ;;  %v807_v27 = vsel %vm225_vm0, %v411_v23, %v585_v21 }
 0x100   : > { %v806_v28 = vsel %vm225_vm0, %v410_v26, %v583_v22 }
 0x102   : > { %v729_v31 = vpop.permute.xlu1 %728 }
 0x103   : > { %v727_v32 = vpop.permute.xlu0 %726  ;;  %v4653_v33 = vsel %vm336_vm3, %v807_v27, %v729_v31 }
 0x104   : > { %v4656_v34 = vsel %vm336_vm3, %v806_v28, %v727_v32 }
 0x105   : > { %3712 = vmatprep.mubr.msk.f32.mxu0 %vm856_vm7, %v4656_v34 }
 0x106   : > { %3713 = vmatmul.mubr.msk.f32.gmra.mrb[26].mxu0 %vm856_vm7, %v4653_v33  ;;  %v589_v35 = vpop.permute.xlu1 %588 }
 0x107   : > { %v587_v38 = vpop.permute.xlu0 %586  ;;  %v809_v44 = vsel %vm225_vm0, %v413_v41, %v589_v35 }
 0x108   : > { %v808_v45 = vsel %vm225_vm0, %v412_v43, %v587_v38 }
 0x10a   : > { %v733_v46 = vpop.permute.xlu1 %732 }
 0x10b   : > { %v731_v47 = vpop.permute.xlu0 %730  ;;  %v4665_v48 = vsel %vm336_vm3, %v809_v44, %v733_v46 }
 0x10c   : > { %v4668_v55 = vsel %vm336_vm3, %v808_v45, %v731_v47 }
 0x10d   : > { %3715 = vmatprep.mubr.msk.f32.mxu0 %vm856_vm7, %v4668_v55 }
 0x10e   : > { %3716 = vmatmul.mubr.msk.f32.gmra.mrb[28].mxu0 %vm856_vm7, %v4665_v48  ;;  %v593_v56 = vpop.permute.xlu1 %592 }
 0x10f   : > { %v591_v57 = vpop.permute.xlu0 %590  ;;  %v811_v60 = vsel %vm225_vm0, %v415_v58, %v593_v56 }
 0x110   : > { %v810_v61 = vsel %vm225_vm0, %v414_v59, %v591_v57 }
 0x112   : > { %v737_v1 = vpop.permute.xlu1 %736 }
 0x113   : > { %v735_v7 = vpop.permute.xlu0 %734  ;;  %v4677_v8 = vsel %vm336_vm3, %v811_v60, %v737_v1 }
 0x114   : > { %v4680_v9 = vsel %vm336_vm3, %v810_v61, %v735_v7 }
 0x115   : > { %3718 = vmatprep.mubr.msk.f32.mxu0 %vm856_vm7, %v4680_v9 }
 0x116   : > { %3719 = vmatmul.mubr.msk.f32.gmra.mrb[30].mxu0 %vm856_vm7, %v4677_v8  ;;  %v529_v10 = vpop.permute.xlu1 %528 }
 0x117   : > { %v527_v11 = vpop.permute.xlu0 %526  ;;  %v779_v16 = vsel %vm225_vm0, %v383_v14, %v529_v10 }
 0x118   : > { %v778_v21 = vsel %vm225_vm0, %v382_v15, %v527_v11 }
 0x11a   : > { %v673_v22 = vpop.permute.xlu1 %672 }
 0x11b   : > { %v671_v23 = vpop.permute.xlu0 %670  ;;  %v815_v26 = vsel %vm336_vm3, %v779_v16, %v673_v22 }
 0x11c   : > { %v814_v27 = vsel %vm336_vm3, %v778_v21, %v671_v23 }
 0x11d   : > { %3725 = vmatprep.mubr.msk.f32.mxu0 %vm856_vm7, %v814_v27 }
 0x11e   : > { %3726 = vmatmul.mubr.msk.f32.vlgmr.msra.gmra.mrb[0].mxu0 %vm856_vm7, %v815_v26 }
 0x11f   : > { %4004 = vmatpush3.bf16.msk.msra.mxu0 %vm4303_vm5, %v4488_v54  ;;  %3728 = vmatprep.mubr.msk.f32.mxu0 %vm856_vm7, %v4470_v42  ;;  %v595_v4 = vpop.permute.xlu0 %594  ;;  %v416_v42 = vld [vmem:[#allocation2 + $0x198] sm:$0xff] }
 0x120   : > { %v812_v54 = vsel %vm225_vm0, %v416_v42, %v595_v4 }
 0x122   : > { %3729 = vmatmul.mubr.msk.f32.gmra.mrb[2].mxu0 %vm856_vm7, %v4478_v49  ;;  %v597_v49 = vpop.permute.xlu1 %596 }
 0x123   : > { %3731 = vmatprep.mubr.msk.f32.mxu0 %vm856_vm7, %v4504_v3 }
 0x126   : > { %3732 = vmatmul.mubr.msk.f32.gmra.mrb[4].mxu0 %vm856_vm7, %v4501_v2 }
 0x127   : > { %3734 = vmatprep.mubr.msk.f32.mxu0 %vm856_vm7, %v4520_v18 }
 0x12a   : > { %3735 = vmatmul.mubr.msk.f32.gmra.mrb[6].mxu0 %vm856_vm7, %v4517_v17 }
 0x12b   : > { %3737 = vmatprep.mubr.msk.f32.mxu0 %vm856_vm7, %v4536_v30 }
 0x12e   : > { %3738 = vmatmul.mubr.msk.f32.gmra.mrb[8].mxu0 %vm856_vm7, %v4533_v29 }
 0x12f   : > { %3740 = vmatprep.mubr.msk.f32.mxu0 %vm856_vm7, %v4548_v40 }
 0x132   : > { %3741 = vmatmul.mubr.msk.f32.gmra.mrb[10].mxu0 %vm856_vm7, %v4545_v39 }
 0x133   : > { %3743 = vmatprep.mubr.msk.f32.mxu0 %vm856_vm7, %v4560_v52 }
 0x136   : > { %3744 = vmatmul.mubr.msk.f32.gmra.mrb[12].mxu0 %vm856_vm7, %v4557_v51 }
 0x137   : > { %3746 = vmatprep.mubr.msk.f32.mxu0 %vm856_vm7, %v4572_v63 }
 0x13a   : > { %3747 = vmatmul.mubr.msk.f32.gmra.mrb[14].mxu0 %vm856_vm7, %v4569_v62 }
 0x13b   : > { %3749 = vmatprep.mubr.msk.f32.mxu0 %vm856_vm7, %v4584_v13 }
 0x13e   : > { %3750 = vmatmul.mubr.msk.f32.gmra.mrb[16].mxu0 %vm856_vm7, %v4581_v12 }
 0x13f   : > { %3752 = vmatprep.mubr.msk.f32.mxu0 %vm856_vm7, %v4596_v25 }
 0x142   : > { %3753 = vmatmul.mubr.msk.f32.gmra.mrb[18].mxu0 %vm856_vm7, %v4593_v24 }
 0x143   : > { %3755 = vmatprep.mubr.msk.f32.mxu0 %vm856_vm7, %v4608_v37 }
 0x146   : > { %3756 = vmatmul.mubr.msk.f32.gmra.mrb[20].mxu0 %vm856_vm7, %v4605_v36 }
 0x147   : > { %3758 = vmatprep.mubr.msk.f32.mxu0 %vm856_vm7, %v4620_v53 }
 0x14a   : > { %3759 = vmatmul.mubr.msk.f32.gmra.mrb[22].mxu0 %vm856_vm7, %v4617_v50 }
 0x14b   : > { %3761 = vmatprep.mubr.msk.f32.mxu0 %vm856_vm7, %v4632_v6 }
 0x14e   : > { %3762 = vmatmul.mubr.msk.f32.gmra.mrb[24].mxu0 %vm856_vm7, %v4629_v5 }
 0x14f   : > { %3764 = vmatprep.mubr.msk.f32.mxu0 %vm856_vm7, %v4644_v20 }
 0x152   : > { %3765 = vmatmul.mubr.msk.f32.gmra.mrb[26].mxu0 %vm856_vm7, %v4641_v19 }
 0x153   : > { %3767 = vmatprep.mubr.msk.f32.mxu0 %vm856_vm7, %v4656_v34 }
 0x156   : > { %3768 = vmatmul.mubr.msk.f32.gmra.mrb[28].mxu0 %vm856_vm7, %v4653_v33 }
 0x157   : > { %3770 = vmatprep.mubr.msk.f32.mxu0 %vm856_vm7, %v4668_v55 }
 0x15a   : > { %3771 = vmatmul.mubr.msk.f32.gmra.mrb[30].mxu0 %vm856_vm7, %v4665_v48 }
 0x15b   : > { %3777 = vmatprep.mubr.msk.f32.mxu0 %vm856_vm7, %v4504_v3  ;;  %v739_v3 = vpop.permute.xlu0 %738 }
 0x15e   : > { %3778 = vmatmul.mubr.msk.f32.vlgmr.msra.gmra.mrb[0].mxu0 %vm856_vm7, %v4501_v2  ;;  %v417_v2 = vld [vmem:[#allocation2 + $0x1a0] sm:$0xff] }
 0x15f   : > { %3780 = vmatprep.mubr.msk.f32.mxu0 %vm856_vm7, %v4520_v18  ;;  %v848_v18 = vsel %vm336_vm3, %v812_v54, %v739_v3 }
 0x162   : > { %3781 = vmatmul.mubr.msk.f32.gmra.mrb[2].mxu0 %vm856_vm7, %v4517_v17  ;;  %v813_v17 = vsel %vm225_vm0, %v417_v2, %v597_v49 }
 0x163   : > { %3783 = vmatprep.mubr.msk.f32.mxu0 %vm856_vm7, %v4536_v30 }
 0x166   : > { %3784 = vmatmul.mubr.msk.f32.gmra.mrb[4].mxu0 %vm856_vm7, %v4533_v29  ;;  %v741_v29 = vpop.permute.xlu1 %740 }
 0x167   : > { %3786 = vmatprep.mubr.msk.f32.mxu0 %vm856_vm7, %v4548_v40  ;;  %v849_v30 = vsel %vm336_vm3, %v813_v17, %v741_v29  ;;  %v1824_v40 = vld [vmem:[#allocation3 + $0x1] sm:$0xff] }
 0x168   : > { %1932 = vrot.lane.b32.xlu0 %v1824_v40, %s4168_s29 }
 0x16a   : > { %3787 = vmatmul.mubr.msk.f32.gmra.mrb[6].mxu0 %vm856_vm7, %v4545_v39  ;;  %v1825_v39 = vld [vmem:[#allocation3 + $0x9] sm:$0xff] }
 0x16b   : > { %3789 = vmatprep.mubr.msk.f32.mxu0 %vm856_vm7, %v4560_v52  ;;  %1934 = vrot.lane.b32.xlu1 %v1825_v39, %s4168_s29  ;;  %v3355_v52 = vld [vmem:[%s5515_s3 + $0x18] sm:$0xff] }
 0x16e   : > { %3790 = vmatmul.mubr.msk.f32.gmra.mrb[8].mxu0 %vm856_vm7, %v4557_v51  ;;  %v4900_v51 = vld [vmem:[%s5514_s2] ss:$0 sm:$0xff] }
 0x16f   : > { %3792 = vmatprep.mubr.msk.f32.mxu0 %vm856_vm7, %v4572_v63 }
 0x172   : > { %3793 = vmatmul.mubr.msk.f32.gmra.mrb[10].mxu0 %vm856_vm7, %v4569_v62  ;;  %v3356_v62 = vld [vmem:[%s5515_s3 + $0x20] sm:$0xff] }
 0x173   : > { %3795 = vmatprep.mubr.msk.f32.mxu0 %vm856_vm7, %v4584_v13  ;;  %v4005_v63 = vpack.c.bf16 %v3356_v62, %v3355_v52 }
 0x175   : > { %4006 = vmatprep.subr.bf16.mxu1 %v4005_v63 }
 0x176   : > { %3796 = vmatmul.mubr.msk.f32.gmra.mrb[12].mxu0 %vm856_vm7, %v4581_v12  ;;  %4008 = vmatpush3.bf16.msra.mxu1 %v4005_v63 }
 0x177   : > { %3798 = vmatprep.mubr.msk.f32.mxu0 %vm856_vm7, %v4596_v25 }
 0x17a   : > { %3799 = vmatmul.mubr.msk.f32.gmra.mrb[14].mxu0 %vm856_vm7, %v4593_v24 }
 0x17b   : > { %3801 = vmatprep.mubr.msk.f32.mxu0 %vm856_vm7, %v4608_v37 }
 0x17e   : > { %3802 = vmatmul.mubr.msk.f32.gmra.mrb[16].mxu0 %vm856_vm7, %v4605_v36 }
 0x17f   : > { %3804 = vmatprep.mubr.msk.f32.mxu0 %vm856_vm7, %v4620_v53 }
 0x182   : > { %3805 = vmatmul.mubr.msk.f32.gmra.mrb[18].mxu0 %vm856_vm7, %v4617_v50  ;;  %v3357_v50 = vld [vmem:[%s5515_s3 + $0x28] sm:$0xff] }
 0x183   : > { %3807 = vmatprep.mubr.msk.f32.mxu0 %vm856_vm7, %v4632_v6  ;;  %3829 = vmatprep.subr.mxu1 %v3357_v50 }
 0x184   : > { %3830 = vmatpush3.msra.mxu1 %v3357_v50 }
 0x186   : > { %3808 = vmatmul.mubr.msk.f32.gmra.mrb[20].mxu0 %vm856_vm7, %v4629_v5 }
 0x187   : > { %3810 = vmatprep.mubr.msk.f32.mxu0 %vm856_vm7, %v4644_v20 }
 0x18a   : > { %3811 = vmatmul.mubr.msk.f32.gmra.mrb[22].mxu0 %vm856_vm7, %v4641_v19 }
 0x18b   : > { %3813 = vmatprep.mubr.msk.f32.mxu0 %vm856_vm7, %v4656_v34 }
 0x18e   : > { %3814 = vmatmul.mubr.msk.f32.gmra.mrb[24].mxu0 %vm856_vm7, %v4653_v33 }
 0x18f   : > { %3816 = vmatprep.mubr.msk.f32.mxu0 %vm856_vm7, %v4668_v55 }
 0x192   : > { %3817 = vmatmul.mubr.msk.f32.gmra.mrb[26].mxu0 %vm856_vm7, %v4665_v48 }
 0x193   : > { %3819 = vmatprep.mubr.msk.f32.mxu0 %vm856_vm7, %v4680_v9 }
 0x196   : > { %3820 = vmatmul.mubr.msk.f32.gmra.mrb[28].mxu0 %vm856_vm7, %v4677_v8 }
 0x197   : > { %3822 = vmatprep.mubr.msk.f32.mxu0 %vm856_vm7, %v848_v18 }
 0x19a   : > { %3823 = vmatmul.mubr.msk.f32.gmra.mrb[30].mxu0 %vm856_vm7, %v849_v30 }
 0x231   : > { %v3779_v0 = vpop.f32.mrb[0].mxu0 }
 0x232   : > { %v1692_v12 = vadd.f32 %v3779_v0, %v4900_v51  ;;  %v1494_v13 = vpop.f32.mrb[1].mxu0 }
 0x233   : > { %v1691_v24 = vadd.f32 %v4900_v51, %v1494_v13 }
 0x234   : > { %v1724_v25 = vmax.f32 %v1692_v12, 0.0 }
 0x235   : > { %v1723_v36 = vmax.f32 %v1691_v24, 0.0  ;;  %v3782_v37 = vpop.f32.mrb[2].mxu0 }
 0x236   : > { %1757 = vst.msk [vmem:[#allocation3 + $0x21] sm:$0xff] %vm336_vm3, %v1724_v25  ;;  %v1694_v53 = vadd.f32 %v3782_v37, %v4900_v51  ;;  %v1504_v5 = vpop.f32.mrb[3].mxu0 }
 0x237   : > { %1756 = vst.msk [vmem:[#allocation3 + $0x19] sm:$0xff] %vm336_vm3, %v1723_v36  ;;  %v1693_v6 = vadd.f32 %v4900_v51, %v1504_v5 }
 0x238   : > { %v1726_v19 = vmax.f32 %v1694_v53, 0.0 }
 0x239   : > { %v1725_v20 = vmax.f32 %v1693_v6, 0.0  ;;  %v3785_v28 = vpop.f32.mrb[4].mxu0 }
 0x23a   : > { %1759 = vst.msk [vmem:[#allocation3 + $0x39] sm:$0xff] %vm336_vm3, %v1726_v19  ;;  %v1696_v31 = vadd.f32 %v3785_v28, %v4900_v51  ;;  %v1514_v32 = vpop.f32.mrb[5].mxu0 }
 0x23b   : > { %1758 = vst.msk [vmem:[#allocation3 + $0x31] sm:$0xff] %vm336_vm3, %v1725_v20  ;;  %v1695_v33 = vadd.f32 %v4900_v51, %v1514_v32 }
 0x23c   : > { %v1728_v34 = vmax.f32 %v1696_v31, 0.0 }
 0x23d   : > { %v1727_v35 = vmax.f32 %v1695_v33, 0.0  ;;  %v3788_v38 = vpop.f32.mrb[6].mxu0  ;;  %v1827_v41 = vld [vmem:[#allocation3 + $0x21] sm:$0xff] }
 0x23e   : > { %1761 = vst.msk [vmem:[#allocation3 + $0x51] sm:$0xff] %vm336_vm3, %v1728_v34  ;;  %v1698_v43 = vadd.f32 %v3788_v38, %v4900_v51  ;;  %1938 = vrot.lane.b32.xlu1 %v1827_v41, %s4168_s29  ;;  %v1524_v44 = vpop.f32.mrb[7].mxu0  ;;  %v1826_v45 = vld [vmem:[#allocation3 + $0x19] sm:$0xff]  ;;  %v1863_v56 = vld [vmem:[#allocation3 + $0x22] sm:$0xff] }
 0x23f   : > { %1760 = vst.msk [vmem:[#allocation3 + $0x49] sm:$0xff] %vm336_vm3, %v1727_v35  ;;  %v1697_v46 = vadd.f32 %v4900_v51, %v1524_v44  ;;  %1936 = vrot.lane.b32.xlu0 %v1826_v45, %s4168_s29  ;;  %v1862_v59 = vld [vmem:[#allocation3 + $0x1a] sm:$0xff] }
 0x240   : > { %v1730_v47 = vmax.f32 %v1698_v43, 0.0 }
 0x241   : > { %v1729_v48 = vmax.f32 %v1697_v46, 0.0  ;;  %v3791_v55 = vpop.f32.mrb[8].mxu0  ;;  %v1829_v8 = vld [vmem:[#allocation3 + $0x39] sm:$0xff] }
 0x242   : > { %1763 = vst.msk [vmem:[#allocation3 + $0x69] sm:$0xff] %vm336_vm3, %v1730_v47  ;;  %v1700_v57 = vadd.f32 %v3791_v55, %v4900_v51  ;;  %2082 = vrot.lane.b32.xlu1 %v1863_v56, %s4170_s24  ;;  %v1534_v58 = vpop.f32.mrb[9].mxu0  ;;  %v1828_v11 = vld [vmem:[#allocation3 + $0x31] sm:$0xff]  ;;  %v1865_v22 = vld [vmem:[#allocation3 + $0x3a] sm:$0xff] }
 0x243   : > { %1762 = vst.msk [vmem:[#allocation3 + $0x61] sm:$0xff] %vm336_vm3, %v1729_v48  ;;  %v1699_v60 = vadd.f32 %v4900_v51, %v1534_v58  ;;  %2080 = vrot.lane.b32.xlu0 %v1862_v59, %s4170_s24  ;;  %v1864_v27 = vld [vmem:[#allocation3 + $0x32] sm:$0xff] }
 0x244   : > { %v1732_v61 = vmax.f32 %v1700_v57, 0.0 }
 0x245   : > { %v1731_v1 = vmax.f32 %v1699_v60, 0.0  ;;  %v3794_v7 = vpop.f32.mrb[10].mxu0  ;;  %v1831_v2 = vld [vmem:[#allocation3 + $0x51] sm:$0xff] }
 0x246   : > { %1765 = vst.msk [vmem:[#allocation3 + $0x81] sm:$0xff] %vm336_vm3, %v1732_v61  ;;  %v1702_v9 = vadd.f32 %v3794_v7, %v4900_v51  ;;  %1942 = vrot.lane.b32.xlu1 %v1829_v8, %s4168_s29  ;;  %v1544_v10 = vpop.f32.mrb[11].mxu0  ;;  %v1830_v18 = vld [vmem:[#allocation3 + $0x49] sm:$0xff]  ;;  %v1867_v52 = vld [vmem:[#allocation3 + $0x52] sm:$0xff] }
 0x247   : > { %1764 = vst.msk [vmem:[#allocation3 + $0x79] sm:$0xff] %vm336_vm3, %v1731_v1  ;;  %v1701_v14 = vadd.f32 %v4900_v51, %v1544_v10  ;;  %1940 = vrot.lane.b32.xlu0 %v1828_v11, %s4168_s29  ;;  %v1866_v63 = vld [vmem:[#allocation3 + $0x4a] sm:$0xff] }
 0x248   : > { %v1734_v15 = vmax.f32 %v1702_v9, 0.0 }
 0x249   : > { %v1733_v16 = vmax.f32 %v1701_v14, 0.0  ;;  %v3797_v21 = vpop.f32.mrb[12].mxu0  ;;  %v1833_v36 = vld [vmem:[#allocation3 + $0x69] sm:$0xff] }
 0x24a   : > { %1767 = vst.msk [vmem:[#allocation3 + $0x99] sm:$0xff] %vm336_vm3, %v1734_v15  ;;  %v1704_v23 = vadd.f32 %v3797_v21, %v4900_v51  ;;  %2086 = vrot.lane.b32.xlu1 %v1865_v22, %s4170_s24  ;;  %v1554_v26 = vpop.f32.mrb[13].mxu0  ;;  %v1832_v53 = vld [vmem:[#allocation3 + $0x61] sm:$0xff]  ;;  %v1869_v28 = vld [vmem:[#allocation3 + $0x6a] sm:$0xff] }
 0x24b   : > { %1766 = vst.msk [vmem:[#allocation3 + $0x91] sm:$0xff] %vm336_vm3, %v1733_v16  ;;  %v1703_v4 = vadd.f32 %v4900_v51, %v1554_v26  ;;  %2084 = vrot.lane.b32.xlu0 %v1864_v27, %s4170_s24  ;;  %v1868_v33 = vld [vmem:[#allocation3 + $0x62] sm:$0xff] }
 0x24c   : > { %v1736_v42 = vmax.f32 %v1704_v23, 0.0 }
 0x24d   : > { %v1735_v49 = vmax.f32 %v1703_v4, 0.0  ;;  %v3800_v54 = vpop.f32.mrb[14].mxu0  ;;  %v1835_v43 = vld [vmem:[#allocation3 + $0x81] sm:$0xff] }
 0x24e   : > { %1769 = vst.msk [vmem:[#allocation3 + $0xb1] sm:$0xff] %vm336_vm3, %v1736_v42  ;;  %v1706_v3 = vadd.f32 %v3800_v54, %v4900_v51  ;;  %1946 = vrot.lane.b32.xlu1 %v1831_v2, %s4168_s29  ;;  %v1564_v17 = vpop.f32.mrb[15].mxu0  ;;  %v1834_v46 = vld [vmem:[#allocation3 + $0x79] sm:$0xff]  ;;  %v1871_v57 = vld [vmem:[#allocation3 + $0x82] sm:$0xff] }
 0x24f   : > { %1768 = vst.msk [vmem:[#allocation3 + $0xa9] sm:$0xff] %vm336_vm3, %v1735_v49  ;;  %v1705_v29 = vadd.f32 %v4900_v51, %v1564_v17  ;;  %1944 = vrot.lane.b32.xlu0 %v1830_v18, %s4168_s29  ;;  %v1870_v60 = vld [vmem:[#allocation3 + $0x7a] sm:$0xff] }
 0x250   : > { %v1738_v30 = vmax.f32 %v1706_v3, 0.0 }
 0x251   : > { %v1737_v39 = vmax.f32 %v1705_v29, 0.0  ;;  %v3803_v40 = vpop.f32.mrb[16].mxu0  ;;  %v1837_v9 = vld [vmem:[#allocation3 + $0x99] sm:$0xff] }
 0x252   : > { %1771 = vst.msk [vmem:[#allocation3 + $0xc9] sm:$0xff] %vm336_vm3, %v1738_v30  ;;  %v1708_v62 = vadd.f32 %v3803_v40, %v4900_v51  ;;  %2090 = vrot.lane.b32.xlu1 %v1867_v52, %s4170_s24  ;;  %v1574_v0 = vpop.f32.mrb[17].mxu0  ;;  %v1836_v14 = vld [vmem:[#allocation3 + $0x91] sm:$0xff]  ;;  %v1873_v23 = vld [vmem:[#allocation3 + $0x9a] sm:$0xff] }
 0x253   : > { %1770 = vst.msk [vmem:[#allocation3 + $0xc1] sm:$0xff] %vm336_vm3, %v1737_v39  ;;  %v1707_v12 = vadd.f32 %v4900_v51, %v1574_v0  ;;  %2088 = vrot.lane.b32.xlu0 %v1866_v63, %s4170_s24  ;;  %v1872_v4 = vld [vmem:[#allocation3 + $0x92] sm:$0xff] }
 0x254   : > { %v1740_v13 = vmax.f32 %v1708_v62, 0.0  ;;  %v2258_v0 = vld [vmem:[%s5515_s3] sm:$0xff] }
 0x255   : > { %v1739_v24 = vmax.f32 %v1707_v12, 0.0  ;;  %v3806_v25 = vpop.f32.mrb[18].mxu0  ;;  %v1839_v3 = vld [vmem:[#allocation3 + $0xb1] sm:$0xff] }
 0x256   : > { %1773 = vst.msk [vmem:[#allocation3 + $0xe1] sm:$0xff] %vm336_vm3, %v1740_v13  ;;  %v1710_v37 = vadd.f32 %v3806_v25, %v4900_v51  ;;  %1950 = vrot.lane.b32.xlu1 %v1833_v36, %s4168_s29  ;;  %v1584_v50 = vpop.f32.mrb[19].mxu0  ;;  %v1838_v29 = vld [vmem:[#allocation3 + $0xa9] sm:$0xff]  ;;  %v1875_v52 = vld [vmem:[#allocation3 + $0xb2] sm:$0xff] }
 0x257   : > { %1772 = vst.msk [vmem:[#allocation3 + $0xd9] sm:$0xff] %vm336_vm3, %v1739_v24  ;;  %v1709_v5 = vadd.f32 %v4900_v51, %v1584_v50  ;;  %1948 = vrot.lane.b32.xlu0 %v1832_v53, %s4168_s29  ;;  %v1874_v62 = vld [vmem:[#allocation3 + $0xaa] sm:$0xff] }
 0x258   : > { %v1742_v6 = vmax.f32 %v1710_v37, 0.0 }
 0x259   : > { %v1741_v19 = vmax.f32 %v1709_v5, 0.0  ;;  %v3809_v20 = vpop.f32.mrb[20].mxu0  ;;  %v1841_v12 = vld [vmem:[#allocation3 + $0xc9] sm:$0xff] }
 0x25a   : > { %1775 = vst.msk [vmem:[#allocation3 + $0xf9] sm:$0xff] %vm336_vm3, %v1742_v6  ;;  %v1712_v31 = vadd.f32 %v3809_v20, %v4900_v51  ;;  %2094 = vrot.lane.b32.xlu1 %v1869_v28, %s4170_s24  ;;  %v1594_v32 = vpop.f32.mrb[21].mxu0  ;;  %v1840_v13 = vld [vmem:[#allocation3 + $0xc1] sm:$0xff]  ;;  %v1877_v24 = vld [vmem:[#allocation3 + $0xca] sm:$0xff] }
 0x25b   : > { %1774 = vst.msk [vmem:[#allocation3 + $0xf1] sm:$0xff] %vm336_vm3, %v1741_v19  ;;  %v1711_v34 = vadd.f32 %v4900_v51, %v1594_v32  ;;  %2092 = vrot.lane.b32.xlu0 %v1868_v33, %s4170_s24  ;;  %v1876_v25 = vld [vmem:[#allocation3 + $0xc2] sm:$0xff] }
 0x25c   : > { %v1744_v35 = vmax.f32 %v1712_v31, 0.0 }
 0x25d   : > { %v1743_v38 = vmax.f32 %v1711_v34, 0.0  ;;  %v3812_v41 = vpop.f32.mrb[22].mxu0  ;;  %v1843_v36 = vld [vmem:[#allocation3 + $0xe1] sm:$0xff] }
 0x25e   : > { %1777 = vst.msk [vmem:[#allocation3 + $0x111] sm:$0xff] %vm336_vm3, %v1744_v35  ;;  %v1714_v44 = vadd.f32 %v3812_v41, %v4900_v51  ;;  %1954 = vrot.lane.b32.xlu1 %v1835_v43, %s4168_s29  ;;  %v1604_v45 = vpop.f32.mrb[23].mxu0  ;;  %v1842_v37 = vld [vmem:[#allocation3 + $0xd9] sm:$0xff]  ;;  %v1879_v50 = vld [vmem:[#allocation3 + $0xe2] sm:$0xff] }
 0x25f   : > { %1776 = vst.msk [vmem:[#allocation3 + $0x109] sm:$0xff] %vm336_vm3, %v1743_v38  ;;  %v1713_v47 = vadd.f32 %v4900_v51, %v1604_v45  ;;  %1952 = vrot.lane.b32.xlu0 %v1834_v46, %s4168_s29  ;;  %v1878_v53 = vld [vmem:[#allocation3 + $0xda] sm:$0xff] }
 0x260   : > { %v1746_v48 = vmax.f32 %v1714_v44, 0.0 }
 0x261   : > { %v1745_v55 = vmax.f32 %v1713_v47, 0.0  ;;  %v3815_v56 = vpop.f32.mrb[24].mxu0  ;;  %v1845_v5 = vld [vmem:[#allocation3 + $0xf9] sm:$0xff] }
 0x262   : > { %1779 = vst.msk [vmem:[#allocation3 + $0x129] sm:$0xff] %vm336_vm3, %v1746_v48  ;;  %v1716_v58 = vadd.f32 %v3815_v56, %v4900_v51  ;;  %2098 = vrot.lane.b32.xlu1 %v1871_v57, %s4170_s24  ;;  %v1614_v59 = vpop.f32.mrb[25].mxu0  ;;  %v1844_v6 = vld [vmem:[#allocation3 + $0xf1] sm:$0xff]  ;;  %v1881_v19 = vld [vmem:[#allocation3 + $0xfa] sm:$0xff]  ;;  %v5039_v57 = vpop.permute.xlu1 %1934 }
 0x263   : > { %1778 = vst.msk [vmem:[#allocation3 + $0x121] sm:$0xff] %vm336_vm3, %v1745_v55  ;;  %v1715_v61 = vadd.f32 %v4900_v51, %v1614_v59  ;;  %2096 = vrot.lane.b32.xlu0 %v1870_v60, %s4170_s24  ;;  %v1880_v20 = vld [vmem:[#allocation3 + $0xf2] sm:$0xff] }
 0x264   : > { %v1748_v1 = vmax.f32 %v1716_v58, 0.0  ;;  %v5042_v58 = vpop.permute.xlu0 %1932 }
 0x265   : > { %v1747_v7 = vmax.f32 %v1715_v61, 0.0  ;;  %v3818_v8 = vpop.f32.mrb[26].mxu0  ;;  %v1847_v28 = vld [vmem:[#allocation3 + $0x111] sm:$0xff] }
 0x266   : > { %1781 = vst.msk [vmem:[#allocation3 + $0x141] sm:$0xff] %vm336_vm3, %v1748_v1  ;;  %v1718_v10 = vadd.f32 %v3818_v8, %v4900_v51  ;;  %1958 = vrot.lane.b32.xlu1 %v1837_v9, %s4168_s29  ;;  %v1624_v11 = vpop.f32.mrb[27].mxu0  ;;  %v1846_v31 = vld [vmem:[#allocation3 + $0x109] sm:$0xff]  ;;  %v1883_v32 = vld [vmem:[#allocation3 + $0x112] sm:$0xff] }
 0x267   : > { %1780 = vst.msk [vmem:[#allocation3 + $0x139] sm:$0xff] %vm336_vm3, %v1747_v7  ;;  %v1717_v15 = vadd.f32 %v4900_v51, %v1624_v11  ;;  %1956 = vrot.lane.b32.xlu0 %v1836_v14, %s4168_s29  ;;  %v1882_v33 = vld [vmem:[#allocation3 + $0x10a] sm:$0xff]  ;;  %v1790_v9 = vld [vmem:[#allocation3 + $0x18] sm:$0xff]  ;;  %v1791_v11 = vld [vmem:[#allocation3 + $0x20] sm:$0xff] }
 0x268   : > { %v1750_v16 = vmax.f32 %v1718_v10, 0.0 }
 0x269   : > { %v1749_v21 = vmax.f32 %v1717_v15, 0.0  ;;  %v3821_v22 = vpop.f32.mrb[28].mxu0  ;;  %v1849_v34 = vld [vmem:[#allocation3 + $0x129] sm:$0xff] }
 0x26a   : > { %1783 = vst.msk [vmem:[#allocation3 + $0x159] sm:$0xff] %vm336_vm3, %v1750_v16  ;;  %v1720_v26 = vadd.f32 %v3821_v22, %v4900_v51  ;;  %2102 = vrot.lane.b32.xlu1 %v1873_v23, %s4170_s24  ;;  %v1634_v27 = vpop.f32.mrb[29].mxu0  ;;  %v1848_v35 = vld [vmem:[#allocation3 + $0x121] sm:$0xff]  ;;  %v1885_v38 = vld [vmem:[#allocation3 + $0x12a] sm:$0xff] }
 0x26b   : > { %1782 = vst.msk [vmem:[#allocation3 + $0x151] sm:$0xff] %vm336_vm3, %v1749_v21  ;;  %v1719_v42 = vadd.f32 %v4900_v51, %v1634_v27  ;;  %2100 = vrot.lane.b32.xlu0 %v1872_v4, %s4170_s24  ;;  %v1884_v41 = vld [vmem:[#allocation3 + $0x122] sm:$0xff] }
 0x26c   : > { %v1752_v49 = vmax.f32 %v1720_v26, 0.0  ;;  %v2260_v27 = vld [vmem:[%s5515_s3 + $0x10] sm:$0xff] }
 0x26d   : > { %v1751_v54 = vmax.f32 %v1719_v42, 0.0  ;;  %v3824_v2 = vpop.f32.mrb[30].mxu0  ;;  %v1851_v43 = vld [vmem:[#allocation3 + $0x141] sm:$0xff] }
 0x26e   : > { %1785 = vst.msk [vmem:[#allocation3 + $0x171] sm:$0xff] %vm336_vm3, %v1752_v49  ;;  %v1722_v17 = vadd.f32 %v3824_v2, %v4900_v51  ;;  %1962 = vrot.lane.b32.xlu1 %v1839_v3, %s4168_s29  ;;  %v1644_v18 = vpop.f32.mrb[31].mxu0  ;;  %v1850_v44 = vld [vmem:[#allocation3 + $0x139] sm:$0xff]  ;;  %v1887_v45 = vld [vmem:[#allocation3 + $0x142] sm:$0xff] }
 0x26f   : > { %1784 = vst.msk [vmem:[#allocation3 + $0x169] sm:$0xff] %vm336_vm3, %v1751_v54  ;;  %v1721_v30 = vadd.f32 %v4900_v51, %v1644_v18  ;;  %1960 = vrot.lane.b32.xlu0 %v1838_v29, %s4168_s29  ;;  %v2259_v51 = vld [vmem:[%s5515_s3 + $0x8] sm:$0xff]  ;;  %v3422_v4 = vld [vmem:[%s5515_s3 + $0x30] sm:$0xff]  ;;  %v3423_v42 = vld [vmem:[%s5515_s3 + $0x38] sm:$0xff] }
 0x270   : > { %v1754_v39 = vmax.f32 %v1722_v17, 0.0  ;;  %v5009_v63 = vpack.c.bf16 %v2259_v51, %v2258_v0  ;;  %v1886_v46 = vld [vmem:[#allocation3 + $0x13a] sm:$0xff]  ;;  %v5073_v17 = vpack.c.bf16 %v3423_v42, %v3422_v4  ;;  %v1861_v18 = vld [vmem:[#allocation3 + $0xa] sm:$0xff] }
 0x271   : > { %v1753_v40 = vmax.f32 %v1721_v30, 0.0  ;;  %v1853_v47 = vld [vmem:[#allocation3 + $0x159] sm:$0xff]  ;;  %v1792_v29 = vld [vmem:[#allocation3 + $0x30] sm:$0xff] }
 0x272   : > { %1787 = vst.msk [vmem:[#allocation3 + $0x189] sm:$0xff] %vm336_vm3, %v1754_v39  ;;  %2106 = vrot.lane.b32.xlu1 %v1875_v52, %s4170_s24  ;;  %4010 = vmatprep.subr.bf16.mxu1 %v5009_v63  ;;  %v1852_v48 = vld [vmem:[#allocation3 + $0x151] sm:$0xff]  ;;  %v1889_v55 = vld [vmem:[#allocation3 + $0x15a] sm:$0xff]  ;;  %v1860_v39 = vld [vmem:[#allocation3 + $0x2] sm:$0xff] }
 0x273   : > { %1786 = vst.msk [vmem:[#allocation3 + $0x181] sm:$0xff] %vm336_vm3, %v1753_v40  ;;  %2104 = vrot.lane.b32.xlu0 %v1874_v62, %s4170_s24  ;;  %v1888_v56 = vld [vmem:[#allocation3 + $0x152] sm:$0xff] }
 0x274   : > { %v1793_v40 = vld [vmem:[#allocation3 + $0x38] sm:$0xff] }
 0x275   : > { %v1855_v59 = vld [vmem:[#allocation3 + $0x171] sm:$0xff] }
 0x276   : > { %1966 = vrot.lane.b32.xlu1 %v1841_v12, %s4168_s29  ;;  %v1854_v60 = vld [vmem:[#allocation3 + $0x169] sm:$0xff]  ;;  %v1891_v7 = vld [vmem:[#allocation3 + $0x172] sm:$0xff]  ;;  %v1859_v12 = vld [vmem:[#allocation3 + $0x1a1] sm:$0xff] }
 0x277   : > { %1964 = vrot.lane.b32.xlu0 %v1840_v13, %s4168_s29  ;;  %v1890_v8 = vld [vmem:[#allocation3 + $0x16a] sm:$0xff] }
 0x279   : > { %v1857_v16 = vld [vmem:[#allocation3 + $0x189] sm:$0xff] }
 0x27a   : > { %2110 = vrot.lane.b32.xlu1 %v1877_v24, %s4170_s24  ;;  %v1856_v23 = vld [vmem:[#allocation3 + $0x181] sm:$0xff]  ;;  %v1893_v2 = vld [vmem:[#allocation3 + $0x18a] sm:$0xff]  ;;  %v1858_v24 = vld [vmem:[#allocation3 + $0x199] sm:$0xff] }
 0x27b   : > { %2108 = vrot.lane.b32.xlu0 %v1876_v25, %s4170_s24  ;;  %v1892_v3 = vld [vmem:[#allocation3 + $0x182] sm:$0xff] }
 0x27e   : > { %1970 = vrot.lane.b32.xlu1 %v1843_v36, %s4168_s29  ;;  %v1895_v36 = vld [vmem:[#allocation3 + $0x1a2] sm:$0xff] }
 0x27f   : > { %1968 = vrot.lane.b32.xlu0 %v1842_v37, %s4168_s29  ;;  %v1794_v37 = vld [vmem:[#allocation3 + $0x48] sm:$0xff] }
 0x282   : > { %2114 = vrot.lane.b32.xlu1 %v1879_v50, %s4170_s24 }
 0x283   : > { %2112 = vrot.lane.b32.xlu0 %v1878_v53, %s4170_s24  ;;  %v1894_v53 = vld [vmem:[#allocation3 + $0x19a] sm:$0xff] }
 0x286   : > { %1974 = vrot.lane.b32.xlu1 %v1845_v5, %s4168_s29  ;;  %v1795_v5 = vld [vmem:[#allocation3 + $0x50] sm:$0xff] }
 0x287   : > { %1972 = vrot.lane.b32.xlu0 %v1844_v6, %s4168_s29 }
 0x28a   : > { %2118 = vrot.lane.b32.xlu1 %v1881_v19, %s4170_s24 }
 0x28b   : > { %2116 = vrot.lane.b32.xlu0 %v1880_v20, %s4170_s24 }
 0x28e   : > { %1978 = vrot.lane.b32.xlu1 %v1847_v28, %s4168_s29 }
 0x28f   : > { %1976 = vrot.lane.b32.xlu0 %v1846_v31, %s4168_s29 }
 0x292   : > { %2122 = vrot.lane.b32.xlu1 %v1883_v32, %s4170_s24 }
 0x293   : > { %2120 = vrot.lane.b32.xlu0 %v1882_v33, %s4170_s24 }
 0x296   : > { %1982 = vrot.lane.b32.xlu1 %v1849_v34, %s4168_s29  ;;  %v1796_v34 = vld [vmem:[#allocation3 + $0x60] sm:$0xff] }
 0x297   : > { %1980 = vrot.lane.b32.xlu0 %v1848_v35, %s4168_s29 }
 0x29a   : > { %2126 = vrot.lane.b32.xlu1 %v1885_v38, %s4170_s24  ;;  %v1797_v38 = vld [vmem:[#allocation3 + $0x68] sm:$0xff] }
 0x29b   : > { %2124 = vrot.lane.b32.xlu0 %v1884_v41, %s4170_s24 }
 0x29e   : > { %1986 = vrot.lane.b32.xlu1 %v1851_v43, %s4168_s29 }
 0x29f   : > { %1984 = vrot.lane.b32.xlu0 %v1850_v44, %s4168_s29 }
 0x2a2   : > { %2130 = vrot.lane.b32.xlu1 %v1887_v45, %s4170_s24 }
 0x2a3   : > { %2128 = vrot.lane.b32.xlu0 %v1886_v46, %s4170_s24 }
 0x2a6   : > { %1990 = vrot.lane.b32.xlu1 %v1853_v47, %s4168_s29 }
 0x2a7   : > { %1988 = vrot.lane.b32.xlu0 %v1852_v48, %s4168_s29 }
 0x2aa   : > { %2134 = vrot.lane.b32.xlu1 %v1889_v55, %s4170_s24  ;;  %v1798_v55 = vld [vmem:[#allocation3 + $0x78] sm:$0xff] }
 0x2ab   : > { %2132 = vrot.lane.b32.xlu0 %v1888_v56, %s4170_s24 }
 0x2ae   : > { %1994 = vrot.lane.b32.xlu1 %v1855_v59, %s4168_s29  ;;  %v1799_v59 = vld [vmem:[#allocation3 + $0x80] sm:$0xff] }
 0x2af   : > { %1992 = vrot.lane.b32.xlu0 %v1854_v60, %s4168_s29 }
 0x2b0   : > { %v1939_v61 = vpop.permute.xlu1 %1938 }
 0x2b1   : > { %v1937_v1 = vpop.permute.xlu0 %1936  ;;  %v2187_v21 = vsel %vm336_vm3, %v1791_v11, %v1939_v61  ;;  %v1800_v11 = vld [vmem:[#allocation3 + $0x90] sm:$0xff] }
 0x2b2   : > { %2138 = vrot.lane.b32.xlu1 %v1891_v7, %s4170_s24  ;;  %v2186_v14 = vsel %vm336_vm3, %v1790_v9, %v1937_v1 }
 0x2b3   : > { %2136 = vrot.lane.b32.xlu0 %v1890_v8, %s4170_s24 }
 0x2b4   : > { %v2083_v10 = vpop.permute.xlu1 %2082 }
 0x2b5   : > { %v2081_v15 = vpop.permute.xlu0 %2080  ;;  %v5055_v26 = vsel %vm2220_vm10, %v2187_v21, %v2083_v10 }
 0x2b6   : > { %1998 = vrot.lane.b32.xlu1 %v1857_v16, %s4168_s29  ;;  %v5052_v22 = vsel %vm2220_vm10, %v2186_v14, %v2081_v15  ;;  %v1801_v15 = vld [vmem:[#allocation3 + $0x98] sm:$0xff] }
 0x2b7   : > { %3831 = vmatprep.mubr.msk.f32.mxu1 %vm2265_vm11, %v5052_v22  ;;  %1996 = vrot.lane.b32.xlu0 %v1856_v23, %s4168_s29 }
 0x2b8   : > { %3832 = vmatmul.mubr.msk.f32.vlgmr.msra.gmra.mrb[0].mxu1 %vm2265_vm11, %v5055_v26  ;;  %v1943_v49 = vpop.permute.xlu1 %1942 }
 0x2b9   : > { %v1941_v54 = vpop.permute.xlu0 %1940  ;;  %4012 = vmatpush3.bf16.msra.mxu1 %v5009_v63  ;;  %v2189_v0 = vsel %vm336_vm3, %v1793_v40, %v1943_v49 }
 0x2ba   : > { %2142 = vrot.lane.b32.xlu1 %v1893_v2, %s4170_s24  ;;  %3883 = vmatprep.subr.mxu1 %v2260_v27  ;;  %v2188_v52 = vsel %vm336_vm3, %v1792_v29, %v1941_v54  ;;  %v1802_v54 = vld [vmem:[#allocation3 + $0xa8] sm:$0xff] }
 0x2bb   : > { %2140 = vrot.lane.b32.xlu0 %v1892_v3, %s4170_s24  ;;  %v1803_v3 = vld [vmem:[#allocation3 + $0xb0] sm:$0xff] }
 0x2bc   : > { %v2087_v30 = vpop.permute.xlu1 %2086 }
 0x2bd   : > { %v2085_v62 = vpop.permute.xlu0 %2084  ;;  %3884 = vmatpush3.msra.mxu1 %v2260_v27  ;;  %v5084_v63 = vsel %vm2220_vm10, %v2189_v0, %v2087_v30  ;;  %v1804_v0 = vld [vmem:[#allocation3 + $0xc0] sm:$0xff] }
 0x2be   : > { %v5079_v51 = vsel %vm2220_vm10, %v2188_v52, %v2085_v62  ;;  %2078 = vrot.lane.b32.xlu1 %v1861_v18, %s4170_s24  ;;  %4014 = vmatprep.subr.bf16.mxu1 %v5073_v17 }
 0x2bf   : > { %3834 = vmatprep.mubr.msk.f32.mxu1 %vm2265_vm11, %v5079_v51  ;;  %2076 = vrot.lane.b32.xlu0 %v1860_v39, %s4170_s24 }
 0x2c0   : > { %3835 = vmatmul.mubr.msk.f32.gmra.mrb[2].mxu1 %vm2265_vm11, %v5084_v63  ;;  %v1947_v13 = vpop.permute.xlu1 %1946 }
 0x2c1   : > { %v1945_v25 = vpop.permute.xlu0 %1944  ;;  %v2191_v20 = vsel %vm336_vm3, %v1795_v5, %v1947_v13  ;;  %v1805_v13 = vld [vmem:[#allocation3 + $0xc8] sm:$0xff] }
 0x2c2   : > { %2002 = vrot.lane.b32.xlu1 %v1859_v12, %s4168_s29  ;;  %v2190_v6 = vsel %vm336_vm3, %v1794_v37, %v1945_v25 }
 0x2c3   : > { %2000 = vrot.lane.b32.xlu0 %v1858_v24, %s4168_s29 }
 0x2c4   : > { %v2091_v50 = vpop.permute.xlu1 %2090 }
 0x2c5   : > { %v2089_v19 = vpop.permute.xlu0 %2088  ;;  %v5100_v31 = vsel %vm2220_vm10, %v2191_v20, %v2091_v50  ;;  %v1807_v20 = vld [vmem:[#allocation3 + $0xe0] sm:$0xff] }
 0x2c6   : > { %v5096_v28 = vsel %vm2220_vm10, %v2190_v6, %v2089_v19  ;;  %2146 = vrot.lane.b32.xlu1 %v1895_v36, %s4170_s24  ;;  %v1806_v6 = vld [vmem:[#allocation3 + $0xd8] sm:$0xff] }
 0x2c7   : > { %3837 = vmatprep.mubr.msk.f32.mxu1 %vm2265_vm11, %v5096_v28  ;;  %2144 = vrot.lane.b32.xlu0 %v1894_v53, %s4170_s24 }
 0x2c8   : > { %3838 = vmatmul.mubr.msk.f32.gmra.mrb[4].mxu1 %vm2265_vm11, %v5100_v31  ;;  %v1951_v32 = vpop.permute.xlu1 %1950 }
 0x2c9   : > { %v1949_v33 = vpop.permute.xlu0 %1948  ;;  %v2193_v44 = vsel %vm336_vm3, %v1797_v38, %v1951_v32 }
 0x2ca   : > { %v2192_v41 = vsel %vm336_vm3, %v1796_v34, %v1949_v33 }
 0x2cc   : > { %v2095_v35 = vpop.permute.xlu1 %2094 }
 0x2cd   : > { %v2093_v43 = vpop.permute.xlu0 %2092  ;;  %v5113_v46 = vsel %vm2220_vm10, %v2193_v44, %v2095_v35  ;;  %v1808_v44 = vld [vmem:[#allocation3 + $0xf0] sm:$0xff] }
 0x2ce   : > { %v5110_v45 = vsel %vm2220_vm10, %v2192_v41, %v2093_v43 }
 0x2cf   : > { %3840 = vmatprep.mubr.msk.f32.mxu1 %vm2265_vm11, %v5110_v45 }
 0x2d0   : > { %3841 = vmatmul.mubr.msk.f32.gmra.mrb[6].mxu1 %vm2265_vm11, %v5113_v46  ;;  %v1955_v47 = vpop.permute.xlu1 %1954 }
 0x2d1   : > { %v1953_v48 = vpop.permute.xlu0 %1952  ;;  %v2195_v1 = vsel %vm336_vm3, %v1799_v59, %v1955_v47 }
 0x2d2   : > { %v2194_v60 = vsel %vm336_vm3, %v1798_v55, %v1953_v48  ;;  %v1809_v48 = vld [vmem:[#allocation3 + $0xf8] sm:$0xff] }
 0x2d4   : > { %v2099_v56 = vpop.permute.xlu1 %2098 }
 0x2d5   : > { %v2097_v61 = vpop.permute.xlu0 %2096  ;;  %v5125_v8 = vsel %vm2220_vm10, %v2195_v1, %v2099_v56 }
 0x2d6   : > { %v5122_v7 = vsel %vm2220_vm10, %v2194_v60, %v2097_v61 }
 0x2d7   : > { %3843 = vmatprep.mubr.msk.f32.mxu1 %vm2265_vm11, %v5122_v7 }
 0x2d8   : > { %3844 = vmatmul.mubr.msk.f32.gmra.mrb[8].mxu1 %vm2265_vm11, %v5125_v8  ;;  %v1959_v9 = vpop.permute.xlu1 %1958 }
 0x2d9   : > { %v1957_v10 = vpop.permute.xlu0 %1956  ;;  %v2197_v23 = vsel %vm336_vm3, %v1801_v15, %v1959_v9 }
 0x2da   : > { %v2196_v16 = vsel %vm336_vm3, %v1800_v11, %v1957_v10  ;;  %v1810_v10 = vld [vmem:[#allocation3 + $0x108] sm:$0xff] }
 0x2dc   : > { %v2103_v14 = vpop.permute.xlu1 %2102 }
 0x2dd   : > { %v2101_v21 = vpop.permute.xlu0 %2100  ;;  %v5137_v4 = vsel %vm2220_vm10, %v2197_v23, %v2103_v14  ;;  %v1811_v14 = vld [vmem:[#allocation3 + $0x110] sm:$0xff] }
 0x2de   : > { %v5134_v27 = vsel %vm2220_vm10, %v2196_v16, %v2101_v21 }
 0x2df   : > { %3846 = vmatprep.mubr.msk.f32.mxu1 %vm2265_vm11, %v5134_v27 }
 0x2e0   : > { %3847 = vmatmul.mubr.msk.f32.gmra.mrb[10].mxu1 %vm2265_vm11, %v5137_v4  ;;  %v1963_v42 = vpop.permute.xlu1 %1962 }
 0x2e1   : > { %v1961_v49 = vpop.permute.xlu0 %1960  ;;  %v2199_v30 = vsel %vm336_vm3, %v1803_v3, %v1963_v42 }
 0x2e2   : > { %v2198_v18 = vsel %vm336_vm3, %v1802_v54, %v1961_v49 }
 0x2e4   : > { %v2107_v2 = vpop.permute.xlu1 %2106 }
 0x2e5   : > { %v2105_v29 = vpop.permute.xlu0 %2104  ;;  %v5149_v40 = vsel %vm2220_vm10, %v2199_v30, %v2107_v2  ;;  %v1812_v2 = vld [vmem:[#allocation3 + $0x120] sm:$0xff] }
 0x2e6   : > { %v5146_v39 = vsel %vm2220_vm10, %v2198_v18, %v2105_v29  ;;  %v1813_v18 = vld [vmem:[#allocation3 + $0x128] sm:$0xff] }
 0x2e7   : > { %3849 = vmatprep.mubr.msk.f32.mxu1 %vm2265_vm11, %v5146_v39 }
 0x2e8   : > { %3850 = vmatmul.mubr.msk.f32.gmra.mrb[12].mxu1 %vm2265_vm11, %v5149_v40  ;;  %v1967_v52 = vpop.permute.xlu1 %1966 }
 0x2e9   : > { %v1965_v62 = vpop.permute.xlu0 %1964  ;;  %v2201_v36 = vsel %vm336_vm3, %v1805_v13, %v1967_v52 }
 0x2ea   : > { %v2200_v24 = vsel %vm336_vm3, %v1804_v0, %v1965_v62 }
 0x2ec   : > { %v2111_v12 = vpop.permute.xlu1 %2110 }
 0x2ed   : > { %v2109_v25 = vpop.permute.xlu0 %2108  ;;  %v5161_v50 = vsel %vm2220_vm10, %v2201_v36, %v2111_v12  ;;  %v1815_v36 = vld [vmem:[#allocation3 + $0x140] sm:$0xff] }
 0x2ee   : > { %v5158_v37 = vsel %vm2220_vm10, %v2200_v24, %v2109_v25  ;;  %v1814_v24 = vld [vmem:[#allocation3 + $0x138] sm:$0xff] }
 0x2ef   : > { %3852 = vmatprep.mubr.msk.f32.mxu1 %vm2265_vm11, %v5158_v37 }
 0x2f0   : > { %3853 = vmatmul.mubr.msk.f32.gmra.mrb[14].mxu1 %vm2265_vm11, %v5161_v50  ;;  %v1971_v53 = vpop.permute.xlu1 %1970 }
 0x2f1   : > { %v1969_v5 = vpop.permute.xlu0 %1968  ;;  %v2203_v34 = vsel %vm336_vm3, %v1807_v20, %v1971_v53 }
 0x2f2   : > { %v2202_v32 = vsel %vm336_vm3, %v1806_v6, %v1969_v5 }
 0x2f4   : > { %v2115_v19 = vpop.permute.xlu1 %2114 }
 0x2f5   : > { %v2113_v33 = vpop.permute.xlu0 %2112  ;;  %v5173_v38 = vsel %vm2220_vm10, %v2203_v34, %v2115_v19  ;;  %v1816_v34 = vld [vmem:[#allocation3 + $0x150] sm:$0xff] }
 0x2f6   : > { %v5170_v35 = vsel %vm2220_vm10, %v2202_v32, %v2113_v33 }
 0x2f7   : > { %3855 = vmatprep.mubr.msk.f32.mxu1 %vm2265_vm11, %v5170_v35 }
 0x2f8   : > { %3856 = vmatmul.mubr.msk.f32.gmra.mrb[16].mxu1 %vm2265_vm11, %v5173_v38  ;;  %v1975_v41 = vpop.permute.xlu1 %1974 }
 0x2f9   : > { %v1973_v43 = vpop.permute.xlu0 %1972  ;;  %v2205_v59 = vsel %vm336_vm3, %v1809_v48, %v1975_v41 }
 0x2fa   : > { %v2204_v55 = vsel %vm336_vm3, %v1808_v44, %v1973_v43  ;;  %v1817_v43 = vld [vmem:[#allocation3 + $0x158] sm:$0xff] }
 0x2fc   : > { %v2119_v47 = vpop.permute.xlu1 %2118 }
 0x2fd   : > { %v2117_v56 = vpop.permute.xlu0 %2116  ;;  %v5185_v61 = vsel %vm2220_vm10, %v2205_v59, %v2119_v47 }
 0x2fe   : > { %v5182_v60 = vsel %vm2220_vm10, %v2204_v55, %v2117_v56 }
 0x2ff   : > { %3858 = vmatprep.mubr.msk.f32.mxu1 %vm2265_vm11, %v5182_v60 }
 0x300   : > { %3859 = vmatmul.mubr.msk.f32.gmra.mrb[18].mxu1 %vm2265_vm11, %v5185_v61  ;;  %v1979_v1 = vpop.permute.xlu1 %1978 }
 0x301   : > { %v1977_v9 = vpop.permute.xlu0 %1976  ;;  %v2207_v21 = vsel %vm336_vm3, %v1811_v14, %v1979_v1 }
 0x302   : > { %v2206_v15 = vsel %vm336_vm3, %v1810_v10, %v1977_v9  ;;  %v1818_v9 = vld [vmem:[#allocation3 + $0x168] sm:$0xff] }
 0x304   : > { %v2123_v11 = vpop.permute.xlu1 %2122 }
 0x305   : > { %v2121_v16 = vpop.permute.xlu0 %2120  ;;  %v5197_v42 = vsel %vm2220_vm10, %v2207_v21, %v2123_v11  ;;  %v1819_v11 = vld [vmem:[#allocation3 + $0x170] sm:$0xff] }
 0x306   : > { %v5194_v23 = vsel %vm2220_vm10, %v2206_v15, %v2121_v16 }
 0x307   : > { %3861 = vmatprep.mubr.msk.f32.mxu1 %vm2265_vm11, %v5194_v23 }
 0x308   : > { %3862 = vmatmul.mubr.msk.f32.gmra.mrb[20].mxu1 %vm2265_vm11, %v5197_v42  ;;  %v1983_v49 = vpop.permute.xlu1 %1982 }
 0x309   : > { %v1981_v54 = vpop.permute.xlu0 %1980  ;;  %v2209_v52 = vsel %vm336_vm3, %v1813_v18, %v1983_v49 }
 0x30a   : > { %v2208_v29 = vsel %vm336_vm3, %v1812_v2, %v1981_v54 }
 0x30c   : > { %v2127_v3 = vpop.permute.xlu1 %2126 }
 0x30d   : > { %v2125_v30 = vpop.permute.xlu0 %2124  ;;  %v5209_v0 = vsel %vm2220_vm10, %v2209_v52, %v2127_v3  ;;  %v1820_v3 = vld [vmem:[#allocation3 + $0x180] sm:$0xff] }
 0x30e   : > { %v5206_v62 = vsel %vm2220_vm10, %v2208_v29, %v2125_v30  ;;  %v1821_v29 = vld [vmem:[#allocation3 + $0x188] sm:$0xff] }
 0x30f   : > { %3864 = vmatprep.mubr.msk.f32.mxu1 %vm2265_vm11, %v5206_v62 }
 0x310   : > { %3865 = vmatmul.mubr.msk.f32.gmra.mrb[22].mxu1 %vm2265_vm11, %v5209_v0  ;;  %v1987_v12 = vpop.permute.xlu1 %1986 }
 0x311   : > { %v1985_v13 = vpop.permute.xlu0 %1984  ;;  %v2211_v6 = vsel %vm336_vm3, %v1815_v36, %v1987_v12  ;;  %v1788_v12 = vld [vmem:[#allocation3] sm:$0xff] }
 0x312   : > { %v2210_v53 = vsel %vm336_vm3, %v1814_v24, %v1985_v13 }
 0x314   : > { %v2131_v25 = vpop.permute.xlu1 %2130 }
 0x315   : > { %v2129_v5 = vpop.permute.xlu0 %2128  ;;  %v5221_v20 = vsel %vm2220_vm10, %v2211_v6, %v2131_v25  ;;  %v1789_v25 = vld [vmem:[#allocation3 + $0x8] sm:$0xff] }
 0x316   : > { %v5218_v19 = vsel %vm2220_vm10, %v2210_v53, %v2129_v5  ;;  %v2184_v5 = vsel %vm336_vm3, %v1788_v12, %v5042_v58  ;;  %v1822_v58 = vld [vmem:[#allocation3 + $0x198] sm:$0xff] }
 0x317   : > { %3867 = vmatprep.mubr.msk.f32.mxu1 %vm2265_vm11, %v5218_v19 }
 0x318   : > { %3868 = vmatmul.mubr.msk.f32.gmra.mrb[24].mxu1 %vm2265_vm11, %v5221_v20  ;;  %v1991_v32 = vpop.permute.xlu1 %1990 }
 0x319   : > { %v1989_v33 = vpop.permute.xlu0 %1988  ;;  %v2213_v48 = vsel %vm336_vm3, %v1817_v43, %v1991_v32  ;;  %v2185_v32 = vsel %vm336_vm3, %v1789_v25, %v5039_v57 }
 0x31a   : > { %v2212_v44 = vsel %vm336_vm3, %v1816_v34, %v1989_v33 }
 0x31c   : > { %v2135_v41 = vpop.permute.xlu1 %2134 }
 0x31d   : > { %v2133_v47 = vpop.permute.xlu0 %2132  ;;  %v5233_v56 = vsel %vm2220_vm10, %v2213_v48, %v2135_v41  ;;  %v3424_v41 = vld [vmem:[%s5515_s3 + $0x40] sm:$0xff] }
 0x31e   : > { %v5230_v55 = vsel %vm2220_vm10, %v2212_v44, %v2133_v47 }
 0x31f   : > { %3870 = vmatprep.mubr.msk.f32.mxu1 %vm2265_vm11, %v5230_v55 }
 0x320   : > { %3871 = vmatmul.mubr.msk.f32.gmra.mrb[26].mxu1 %vm2265_vm11, %v5233_v56  ;;  %v1995_v59 = vpop.permute.xlu1 %1994 }
 0x321   : > { %v1993_v1 = vpop.permute.xlu0 %1992  ;;  %v2215_v16 = vsel %vm336_vm3, %v1819_v11, %v1995_v59 }
 0x322   : > { %v2214_v14 = vsel %vm336_vm3, %v1818_v9, %v1993_v1 }
 0x324   : > { %v2139_v10 = vpop.permute.xlu1 %2138 }
 0x325   : > { %v2137_v15 = vpop.permute.xlu0 %2136  ;;  %v5245_v49 = vsel %vm2220_vm10, %v2215_v16, %v2139_v10 }
 0x326   : > { %v5242_v21 = vsel %vm2220_vm10, %v2214_v14, %v2137_v15 }
 0x327   : > { %3873 = vmatprep.mubr.msk.f32.mxu1 %vm2265_vm11, %v5242_v21 }
 0x328   : > { %3874 = vmatmul.mubr.msk.f32.gmra.mrb[28].mxu1 %vm2265_vm11, %v5245_v49  ;;  %v1999_v54 = vpop.permute.xlu1 %1998 }
 0x329   : > { %v1997_v2 = vpop.permute.xlu0 %1996  ;;  %v2217_v13 = vsel %vm336_vm3, %v1821_v29, %v1999_v54 }
 0x32a   : > { %v2216_v30 = vsel %vm336_vm3, %v1820_v3, %v1997_v2 }
 0x32c   : > { %v2143_v18 = vpop.permute.xlu1 %2142 }
 0x32d   : > { %v2141_v52 = vpop.permute.xlu0 %2140  ;;  %v5257_v36 = vsel %vm2220_vm10, %v2217_v13, %v2143_v18 }
 0x32e   : > { %v5254_v24 = vsel %vm2220_vm10, %v2216_v30, %v2141_v52 }
 0x32f   : > { %3876 = vmatprep.mubr.msk.f32.mxu1 %vm2265_vm11, %v5254_v24 }
 0x330   : > { %v2079_v53 = vpop.permute.xlu1 %2078  ;;  %3877 = vmatmul.mubr.msk.f32.gmra.mrb[30].mxu1 %vm2265_vm11, %v5257_v36 }
 0x331   : > { %v2077_v6 = vpop.permute.xlu0 %2076  ;;  %v2222_v34 = vsel %vm2220_vm10, %v2185_v32, %v2079_v53 }
 0x332   : > { %v2221_v33 = vsel %vm2220_vm10, %v2184_v5, %v2077_v6 }
 0x333   : > { %3885 = vmatprep.mubr.msk.f32.mxu1 %vm2265_vm11, %v2221_v33 }
 0x334   : > { %3886 = vmatmul.mubr.msk.f32.vlgmr.msra.gmra.mrb[0].mxu1 %vm2265_vm11, %v2222_v34 }
 0x335   : > { %4016 = vmatpush3.bf16.msra.mxu1 %v5073_v17  ;;  %3888 = vmatprep.mubr.msk.f32.mxu1 %vm2265_vm11, %v5052_v22  ;;  %v2001_v57 = vpop.permute.xlu0 %2000  ;;  %v2003_v22 = vpop.permute.xlu1 %2002 }
 0x336   : > { %3937 = vmatprep.subr.mxu1 %v3424_v41 }
 0x338   : > { %3889 = vmatmul.mubr.msk.f32.gmra.mrb[2].mxu1 %vm2265_vm11, %v5055_v26  ;;  %v2218_v26 = vsel %vm336_vm3, %v1822_v58, %v2001_v57 }
 0x339   : > { %3891 = vmatprep.mubr.msk.f32.mxu1 %vm2265_vm11, %v5079_v51  ;;  %3938 = vmatpush3.msra.mxu1 %v3424_v41  ;;  %v2145_v17 = vpop.permute.xlu0 %2144 }
 0x33c   : > { %3892 = vmatmul.mubr.msk.f32.gmra.mrb[4].mxu1 %vm2265_vm11, %v5084_v63 }
 0x33d   : > { %3894 = vmatprep.mubr.msk.f32.mxu1 %vm2265_vm11, %v5096_v28 }
 0x340   : > { %3895 = vmatmul.mubr.msk.f32.gmra.mrb[6].mxu1 %vm2265_vm11, %v5100_v31 }
 0x341   : > { %3897 = vmatprep.mubr.msk.f32.mxu1 %vm2265_vm11, %v5110_v45 }
 0x344   : > { %3898 = vmatmul.mubr.msk.f32.gmra.mrb[8].mxu1 %vm2265_vm11, %v5113_v46 }
 0x345   : > { %3900 = vmatprep.mubr.msk.f32.mxu1 %vm2265_vm11, %v5122_v7 }
 0x348   : > { %3901 = vmatmul.mubr.msk.f32.gmra.mrb[10].mxu1 %vm2265_vm11, %v5125_v8 }
 0x349   : > { %3903 = vmatprep.mubr.msk.f32.mxu1 %vm2265_vm11, %v5134_v27 }
 0x34c   : > { %3904 = vmatmul.mubr.msk.f32.gmra.mrb[12].mxu1 %vm2265_vm11, %v5137_v4 }
 0x34d   : > { %3906 = vmatprep.mubr.msk.f32.mxu1 %vm2265_vm11, %v5146_v39 }
 0x350   : > { %3907 = vmatmul.mubr.msk.f32.gmra.mrb[14].mxu1 %vm2265_vm11, %v5149_v40 }
 0x351   : > { %3909 = vmatprep.mubr.msk.f32.mxu1 %vm2265_vm11, %v5158_v37 }
 0x354   : > { %3910 = vmatmul.mubr.msk.f32.gmra.mrb[16].mxu1 %vm2265_vm11, %v5161_v50 }
 0x355   : > { %3912 = vmatprep.mubr.msk.f32.mxu1 %vm2265_vm11, %v5170_v35 }
 0x358   : > { %3913 = vmatmul.mubr.msk.f32.gmra.mrb[18].mxu1 %vm2265_vm11, %v5173_v38 }
 0x359   : > { %3915 = vmatprep.mubr.msk.f32.mxu1 %vm2265_vm11, %v5182_v60 }
 0x35c   : > { %3916 = vmatmul.mubr.msk.f32.gmra.mrb[20].mxu1 %vm2265_vm11, %v5185_v61 }
 0x35d   : > { %3918 = vmatprep.mubr.msk.f32.mxu1 %vm2265_vm11, %v5194_v23 }
 0x360   : > { %3919 = vmatmul.mubr.msk.f32.gmra.mrb[22].mxu1 %vm2265_vm11, %v5197_v42 }
 0x361   : > { %3921 = vmatprep.mubr.msk.f32.mxu1 %vm2265_vm11, %v5206_v62 }
 0x364   : > { %3922 = vmatmul.mubr.msk.f32.gmra.mrb[24].mxu1 %vm2265_vm11, %v5209_v0 }
 0x365   : > { %3924 = vmatprep.mubr.msk.f32.mxu1 %vm2265_vm11, %v5218_v19 }
 0x368   : > { %3925 = vmatmul.mubr.msk.f32.gmra.mrb[26].mxu1 %vm2265_vm11, %v5221_v20 }
 0x369   : > { %3927 = vmatprep.mubr.msk.f32.mxu1 %vm2265_vm11, %v5230_v55 }
 0x36c   : > { %3928 = vmatmul.mubr.msk.f32.gmra.mrb[28].mxu1 %vm2265_vm11, %v5233_v56 }
 0x36d   : > { %3930 = vmatprep.mubr.msk.f32.mxu1 %vm2265_vm11, %v5242_v21 }
 0x370   : > { %3931 = vmatmul.mubr.msk.f32.gmra.mrb[30].mxu1 %vm2265_vm11, %v5245_v49 }
 0x371   : > { %3939 = vmatprep.mubr.msk.f32.mxu1 %vm2265_vm11, %v5079_v51  ;;  %v1823_v51 = vld [vmem:[#allocation3 + $0x1a0] sm:$0xff] }
 0x374   : > { %3940 = vmatmul.mubr.msk.f32.vlgmr.msra.gmra.mrb[0].mxu1 %vm2265_vm11, %v5084_v63  ;;  %v2255_v63 = vsel %vm2220_vm10, %v2218_v26, %v2145_v17 }
 0x375   : > { %3942 = vmatprep.mubr.msk.f32.mxu1 %vm2265_vm11, %v5096_v28  ;;  %v2219_v28 = vsel %vm336_vm3, %v1823_v51, %v2003_v22 }
 0x378   : > { %3943 = vmatmul.mubr.msk.f32.gmra.mrb[2].mxu1 %vm2265_vm11, %v5100_v31  ;;  %v2147_v31 = vpop.permute.xlu1 %2146 }
 0x379   : > { %3945 = vmatprep.mubr.msk.f32.mxu1 %vm2265_vm11, %v5110_v45  ;;  %v2256_v45 = vsel %vm2220_vm10, %v2219_v28, %v2147_v31 }
 0x37c   : > { %3946 = vmatmul.mubr.msk.f32.gmra.mrb[4].mxu1 %vm2265_vm11, %v5113_v46  ;;  %v5404_v46 = vld [vmem:[%s5516_s4] ss:$0 sm:$0xff] }
 0x37d   : > { %3948 = vmatprep.mubr.msk.f32.mxu1 %vm2265_vm11, %v5122_v7 }
 0x380   : > { %3949 = vmatmul.mubr.msk.f32.gmra.mrb[6].mxu1 %vm2265_vm11, %v5125_v8 }
 0x381   : > { %3951 = vmatprep.mubr.msk.f32.mxu1 %vm2265_vm11, %v5134_v27 }
 0x384   : > { %3952 = vmatmul.mubr.msk.f32.gmra.mrb[8].mxu1 %vm2265_vm11, %v5137_v4 }
 0x385   : > { %3954 = vmatprep.mubr.msk.f32.mxu1 %vm2265_vm11, %v5146_v39 }
 0x388   : > { %3955 = vmatmul.mubr.msk.f32.gmra.mrb[10].mxu1 %vm2265_vm11, %v5149_v40 }
 0x389   : > { %3957 = vmatprep.mubr.msk.f32.mxu1 %vm2265_vm11, %v5158_v37 }
 0x38c   : > { %3958 = vmatmul.mubr.msk.f32.gmra.mrb[12].mxu1 %vm2265_vm11, %v5161_v50 }
 0x38d   : > { %3960 = vmatprep.mubr.msk.f32.mxu1 %vm2265_vm11, %v5170_v35 }
 0x390   : > { %3961 = vmatmul.mubr.msk.f32.gmra.mrb[14].mxu1 %vm2265_vm11, %v5173_v38 }
 0x391   : > { %3963 = vmatprep.mubr.msk.f32.mxu1 %vm2265_vm11, %v5182_v60 }
 0x394   : > { %3964 = vmatmul.mubr.msk.f32.gmra.mrb[16].mxu1 %vm2265_vm11, %v5185_v61 }
 0x395   : > { %3966 = vmatprep.mubr.msk.f32.mxu1 %vm2265_vm11, %v5194_v23 }
 0x398   : > { %3967 = vmatmul.mubr.msk.f32.gmra.mrb[18].mxu1 %vm2265_vm11, %v5197_v42 }
 0x399   : > { %3969 = vmatprep.mubr.msk.f32.mxu1 %vm2265_vm11, %v5206_v62 }
 0x39c   : > { %3970 = vmatmul.mubr.msk.f32.gmra.mrb[20].mxu1 %vm2265_vm11, %v5209_v0 }
 0x39d   : > { %3972 = vmatprep.mubr.msk.f32.mxu1 %vm2265_vm11, %v5218_v19 }
 0x3a0   : > { %3973 = vmatmul.mubr.msk.f32.gmra.mrb[22].mxu1 %vm2265_vm11, %v5221_v20 }
 0x3a1   : > { %3975 = vmatprep.mubr.msk.f32.mxu1 %vm2265_vm11, %v5230_v55 }
 0x3a4   : > { %3976 = vmatmul.mubr.msk.f32.gmra.mrb[24].mxu1 %vm2265_vm11, %v5233_v56 }
 0x3a5   : > { %3978 = vmatprep.mubr.msk.f32.mxu1 %vm2265_vm11, %v5242_v21 }
 0x3a8   : > { %3979 = vmatmul.mubr.msk.f32.gmra.mrb[26].mxu1 %vm2265_vm11, %v5245_v49 }
 0x3a9   : > { %3981 = vmatprep.mubr.msk.f32.mxu1 %vm2265_vm11, %v5254_v24 }
 0x3ac   : > { %3982 = vmatmul.mubr.msk.f32.gmra.mrb[28].mxu1 %vm2265_vm11, %v5257_v36 }
 0x3ad   : > { %3984 = vmatprep.mubr.msk.f32.mxu1 %vm2265_vm11, %v2255_v63 }
 0x3b0   : > { %3985 = vmatmul.mubr.msk.f32.gmra.mrb[30].mxu1 %vm2265_vm11, %v2256_v45 }
 0x447   : > { %v3941_v7 = vpop.f32.mrb[0].mxu1 }
 0x448   : > { %v3092_v8 = vadd.f32 %v3941_v7, %v5404_v46  ;;  %v2894_v27 = vpop.f32.mrb[1].mxu1 }
 0x449   : > { %v3091_v4 = vadd.f32 %v5404_v46, %v2894_v27 }
 0x44a   : > { %v3124_v39 = vmax.f32 %v3092_v8, 0.0 }
 0x44b   : > { %v3123_v40 = vmax.f32 %v3091_v4, 0.0  ;;  %v3944_v37 = vpop.f32.mrb[2].mxu1 }
 0x44c   : > { %3156 = vst.msk [vmem:[%s5412_s17 + $0x8] sm:$0xff] %vm336_vm3, %v3124_v39  ;;  %v3094_v50 = vadd.f32 %v3944_v37, %v5404_v46  ;;  %v2904_v35 = vpop.f32.mrb[3].mxu1 }
 0x44d   : > { %3155 = vst.msk [vmem:[%s5412_s17] sm:$0xff] %vm336_vm3, %v3123_v40  ;;  %v3093_v38 = vadd.f32 %v5404_v46, %v2904_v35 }
 0x44e   : > { %v3126_v60 = vmax.f32 %v3094_v50, 0.0 }
 0x44f   : > { %v3125_v61 = vmax.f32 %v3093_v38, 0.0  ;;  %v3947_v23 = vpop.f32.mrb[4].mxu1 }
 0x450   : > { %3158 = vst.msk [vmem:[%s5412_s17 + $0x18] sm:$0xff] %vm336_vm3, %v3126_v60  ;;  %v3096_v42 = vadd.f32 %v3947_v23, %v5404_v46  ;;  %v2914_v62 = vpop.f32.mrb[5].mxu1 }
 0x451   : > { %3157 = vst.msk [vmem:[%s5412_s17 + $0x10] sm:$0xff] %vm336_vm3, %v3125_v61  ;;  %v3095_v0 = vadd.f32 %v5404_v46, %v2914_v62 }
 0x452   : > { %v3128_v19 = vmax.f32 %v3096_v42, 0.0 }
 0x453   : > { %v3127_v20 = vmax.f32 %v3095_v0, 0.0  ;;  %v3950_v43 = vpop.f32.mrb[6].mxu1 }
 0x454   : > { %3160 = vst.msk [vmem:[%s5412_s17 + $0x28] sm:$0xff] %vm336_vm3, %v3128_v19  ;;  %v3098_v44 = vadd.f32 %v3950_v43, %v5404_v46  ;;  %v2924_v47 = vpop.f32.mrb[7].mxu1 }
 0x455   : > { %3159 = vst.msk [vmem:[%s5412_s17 + $0x20] sm:$0xff] %vm336_vm3, %v3127_v20  ;;  %v3097_v48 = vadd.f32 %v5404_v46, %v2924_v47 }
 0x456   : > { %v3130_v55 = vmax.f32 %v3098_v44, 0.0 }
 0x457   : > { %v3129_v56 = vmax.f32 %v3097_v48, 0.0  ;;  %v3953_v59 = vpop.f32.mrb[8].mxu1 }
 0x458   : > { %3162 = vst.msk [vmem:[%s5412_s17 + $0x38] sm:$0xff] %vm336_vm3, %v3130_v55  ;;  %v3100_v1 = vadd.f32 %v3953_v59, %v5404_v46  ;;  %v2934_v9 = vpop.f32.mrb[9].mxu1 }
 0x459   : > { %3161 = vst.msk [vmem:[%s5412_s17 + $0x30] sm:$0xff] %vm336_vm3, %v3129_v56  ;;  %v3099_v10 = vadd.f32 %v5404_v46, %v2934_v9 }
 0x45a   : > { %v3132_v11 = vmax.f32 %v3100_v1, 0.0 }
 0x45b   : > { %v3131_v14 = vmax.f32 %v3099_v10, 0.0  ;;  %v3956_v15 = vpop.f32.mrb[10].mxu1 }
 0x45c   : > { %3164 = vst.msk [vmem:[%s5412_s17 + $0x48] sm:$0xff] %vm336_vm3, %v3132_v11  ;;  %v3102_v16 = vadd.f32 %v3956_v15, %v5404_v46  ;;  %v2944_v21 = vpop.f32.mrb[11].mxu1 }
 0x45d   : > { %3163 = vst.msk [vmem:[%s5412_s17 + $0x40] sm:$0xff] %vm336_vm3, %v3131_v14  ;;  %v3101_v49 = vadd.f32 %v5404_v46, %v2944_v21 }
 0x45e   : > { %v3134_v54 = vmax.f32 %v3102_v16, 0.0 }
 0x45f   : > { %v3133_v2 = vmax.f32 %v3101_v49, 0.0  ;;  %v3959_v3 = vpop.f32.mrb[12].mxu1 }
 0x460   : > { %3166 = vst.msk [vmem:[%s5412_s17 + $0x58] sm:$0xff] %vm336_vm3, %v3134_v54  ;;  %v3104_v18 = vadd.f32 %v3959_v3, %v5404_v46  ;;  %v2954_v29 = vpop.f32.mrb[13].mxu1 }
 0x461   : > { %3165 = vst.msk [vmem:[%s5412_s17 + $0x50] sm:$0xff] %vm336_vm3, %v3133_v2  ;;  %v3103_v30 = vadd.f32 %v5404_v46, %v2954_v29 }
 0x462   : > { %v3136_v52 = vmax.f32 %v3104_v18, 0.0 }
 0x463   : > { %v3135_v12 = vmax.f32 %v3103_v30, 0.0  ;;  %v3962_v13 = vpop.f32.mrb[14].mxu1 }
 0x464   : > { %3168 = vst.msk [vmem:[%s5412_s17 + $0x68] sm:$0xff] %vm336_vm3, %v3136_v52  ;;  %v3106_v24 = vadd.f32 %v3962_v13, %v5404_v46  ;;  %v2964_v25 = vpop.f32.mrb[15].mxu1 }
 0x465   : > { %3167 = vst.msk [vmem:[%s5412_s17 + $0x60] sm:$0xff] %vm336_vm3, %v3135_v12  ;;  %v3105_v36 = vadd.f32 %v5404_v46, %v2964_v25 }
 0x466   : > { %v3138_v53 = vmax.f32 %v3106_v24, 0.0 }
 0x467   : > { %v3137_v5 = vmax.f32 %v3105_v36, 0.0  ;;  %v3965_v6 = vpop.f32.mrb[16].mxu1 }
 0x468   : > { %3170 = vst.msk [vmem:[%s5412_s17 + $0x78] sm:$0xff] %vm336_vm3, %v3138_v53  ;;  %v3108_v32 = vadd.f32 %v3965_v6, %v5404_v46  ;;  %v2974_v33 = vpop.f32.mrb[17].mxu1 }
 0x469   : > { %3169 = vst.msk [vmem:[%s5412_s17 + $0x70] sm:$0xff] %vm336_vm3, %v3137_v5  ;;  %v3107_v34 = vadd.f32 %v5404_v46, %v2974_v33 }
 0x46a   : > { %v3140_v41 = vmax.f32 %v3108_v32, 0.0 }
 0x46b   : > { %v3139_v57 = vmax.f32 %v3107_v34, 0.0  ;;  %v3968_v58 = vpop.f32.mrb[18].mxu1 }
 0x46c   : > { %3172 = vst.msk [vmem:[%s5412_s17 + $0x88] sm:$0xff] %vm336_vm3, %v3140_v41  ;;  %v3110_v22 = vadd.f32 %v3968_v58, %v5404_v46  ;;  %v2984_v26 = vpop.f32.mrb[19].mxu1 }
 0x46d   : > { %3171 = vst.msk [vmem:[%s5412_s17 + $0x80] sm:$0xff] %vm336_vm3, %v3139_v57  ;;  %v3109_v17 = vadd.f32 %v5404_v46, %v2984_v26 }
 0x46e   : > { %v3142_v51 = vmax.f32 %v3110_v22, 0.0 }
 0x46f   : > { %v3141_v63 = vmax.f32 %v3109_v17, 0.0  ;;  %v3971_v28 = vpop.f32.mrb[20].mxu1 }
 0x470   : > { %3174 = vst.msk [vmem:[%s5412_s17 + $0x98] sm:$0xff] %vm336_vm3, %v3142_v51  ;;  %v3112_v31 = vadd.f32 %v3971_v28, %v5404_v46  ;;  %v2994_v45 = vpop.f32.mrb[21].mxu1 }
 0x471   : > { %3173 = vst.msk [vmem:[%s5412_s17 + $0x90] sm:$0xff] %vm336_vm3, %v3141_v63  ;;  %v3111_v7 = vadd.f32 %v5404_v46, %v2994_v45 }
 0x472   : > { %v3144_v8 = vmax.f32 %v3112_v31, 0.0 }
 0x473   : > { %v3143_v27 = vmax.f32 %v3111_v7, 0.0  ;;  %v3974_v4 = vpop.f32.mrb[22].mxu1 }
 0x474   : > { %3176 = vst.msk [vmem:[%s5412_s17 + $0xa8] sm:$0xff] %vm336_vm3, %v3144_v8  ;;  %v3114_v39 = vadd.f32 %v3974_v4, %v5404_v46  ;;  %v3004_v40 = vpop.f32.mrb[23].mxu1 }
 0x475   : > { %3175 = vst.msk [vmem:[%s5412_s17 + $0xa0] sm:$0xff] %vm336_vm3, %v3143_v27  ;;  %v3113_v37 = vadd.f32 %v5404_v46, %v3004_v40 }
 0x476   : > { %v3146_v50 = vmax.f32 %v3114_v39, 0.0 }
 0x477   : > { %v3145_v35 = vmax.f32 %v3113_v37, 0.0  ;;  %v3977_v38 = vpop.f32.mrb[24].mxu1 }
 0x478   : > { %3178 = vst.msk [vmem:[%s5412_s17 + $0xb8] sm:$0xff] %vm336_vm3, %v3146_v50  ;;  %v3116_v60 = vadd.f32 %v3977_v38, %v5404_v46  ;;  %v3014_v61 = vpop.f32.mrb[25].mxu1 }
 0x479   : > { %3177 = vst.msk [vmem:[%s5412_s17 + $0xb0] sm:$0xff] %vm336_vm3, %v3145_v35  ;;  %v3115_v23 = vadd.f32 %v5404_v46, %v3014_v61 }
 0x47a   : > { %v3148_v42 = vmax.f32 %v3116_v60, 0.0 }
 0x47b   : > { %v3147_v62 = vmax.f32 %v3115_v23, 0.0  ;;  %v3980_v0 = vpop.f32.mrb[26].mxu1 }
 0x47c   : > { %3180 = vst.msk [vmem:[%s5412_s17 + $0xc8] sm:$0xff] %vm336_vm3, %v3148_v42  ;;  %v3118_v19 = vadd.f32 %v3980_v0, %v5404_v46  ;;  %v3024_v20 = vpop.f32.mrb[27].mxu1 }
 0x47d   : > { %3179 = vst.msk [vmem:[%s5412_s17 + $0xc0] sm:$0xff] %vm336_vm3, %v3147_v62  ;;  %v3117_v43 = vadd.f32 %v5404_v46, %v3024_v20 }
 0x47e   : > { %v3150_v44 = vmax.f32 %v3118_v19, 0.0 }
 0x47f   : > { %v3149_v47 = vmax.f32 %v3117_v43, 0.0  ;;  %v3983_v48 = vpop.f32.mrb[28].mxu1 }
 0x480   : > { %3182 = vst.msk [vmem:[%s5412_s17 + $0xd8] sm:$0xff] %vm336_vm3, %v3150_v44  ;;  %v3120_v55 = vadd.f32 %v3983_v48, %v5404_v46  ;;  %v3034_v56 = vpop.f32.mrb[29].mxu1 }
 0x481   : > { %3181 = vst.msk [vmem:[%s5412_s17 + $0xd0] sm:$0xff] %vm336_vm3, %v3149_v47  ;;  %v3119_v59 = vadd.f32 %v5404_v46, %v3034_v56 }
 0x482   : > { %v3152_v1 = vmax.f32 %v3120_v55, 0.0 }
 0x483   : > { %v3151_v9 = vmax.f32 %v3119_v59, 0.0  ;;  %v3986_v10 = vpop.f32.mrb[30].mxu1 }
 0x484   : > { %3184 = vst.msk [vmem:[%s5412_s17 + $0xe8] sm:$0xff] %vm336_vm3, %v3152_v1  ;;  %v3122_v11 = vadd.f32 %v3986_v10, %v5404_v46  ;;  %v3044_v14 = vpop.f32.mrb[31].mxu1 }
 0x485   : > { %3183 = vst.msk [vmem:[%s5412_s17 + $0xe0] sm:$0xff] %vm336_vm3, %v3151_v9  ;;  %v3121_v15 = vadd.f32 %v5404_v46, %v3044_v14 }
 0x486   : > { %v3154_v16 = vmax.f32 %v3122_v11, 0.0 }
 0x487   : > { %v3153_v21 = vmax.f32 %v3121_v15, 0.0 }
 0x488   : > { %3186 = vst.msk [vmem:[%s5412_s17 + $0xf8] sm:$0xff] %vm336_vm3, %v3154_v16 }
 0x489   : > { %3185 = vst.msk [vmem:[%s5412_s17 + $0xf0] sm:$0xff] %vm336_vm3, %v3153_v21 }
 0x48a PF: > { %s15_s18 = sadd.s32 1, %s4164_s18  }
 0x48b   : > { %p12_p4 = scmp.ge.s32.totalorder %s15_s18, 4  }
 0x48d   :  { %14 = sbr.rel (!%p12_p4) target bundleno = 1 (0x1), region = 78 }

</bundles_post_ra>
